<compile_context>
chip_gen: v5e
topology: v5e:2x2
jax: 0.10.0
libtpu: 0.0.40
codegen_flags: <defaults>
</compile_context>

<pallas_src>
import functools

import jax
import jax.numpy as jnp
from jax import lax
from jax.experimental import pallas as pl
from jax.experimental.pallas import tpu as pltpu


# --------------------------------------------------------------------------- #
# Kernel
# --------------------------------------------------------------------------- #
def _lstm_textgen_kernel(x_ref,        # ((S+1)*B, I)  time-major, zero-padded last block
                         wih0b_ref,    # (I, 8H)       wih0_t interleaved, layer-1 cols = 0
                         bbig_ref,     # (1, 8H)       [b0 | b1] interleaved per gate
                         wbig_ref,     # (2H, 8H)      fused recurrent weight (see pack)
                         wlin_ref,     # (H, V)        pre-transposed linear weight
                         blin_ref,     # (1, V)
                         out_ref,      # (S*B, V)
                         xa_scr,       # ((S+1)*B, 8H) VMEM scratch
                         h1_scr,       # (S*B, H)      VMEM scratch
                         *, hidden, batch, seq):
    H, B, S = hidden, batch, seq
    H2, H8 = 2 * H, 8 * H

    # ---- hoisted (loop-invariant) loads / constants -------------------------
    wbig = wbig_ref[...]
    # tanh(x) == 2*sigmoid(2x) - 1: pre-scale only the g-gate lanes (both layers)
    # so one full-width sigmoid covers all eight gate blocks.
    lane8 = lax.broadcasted_iota(jnp.int32, (1, H8), 1)
    gate_scale = jnp.where((lane8 >= 4 * H) & (lane8 < 6 * H),
                           jnp.float32(2.0), jnp.float32(1.0))
    lane2 = lax.broadcasted_iota(jnp.int32, (1, H2), 1)
    l0_mask = (lane2 < H).astype(jnp.float32)          # keep layer-0 half only

    # ---- input projection for ALL timesteps at once (off the serial chain) --
    # Layer-0 gate lanes get x_t @ Wih0^T + b0; layer-1 gate lanes get b1.
    xa_scr[...] = (jnp.dot(x_ref[...], wih0b_ref[...],
                           preferred_element_type=jnp.float32)
                   + bbig_ref[...])

    def gates(z, c_cat):
        s = jax.nn.sigmoid(z * gate_scale)              # one EUP op on (B, 8H)
        i = s[:, 0 * H2:1 * H2]                         # [i0 | i1]
        f = s[:, 1 * H2:2 * H2]                         # [f0 | f1]
        g = 2.0 * s[:, 2 * H2:3 * H2] - 1.0             # == tanh(z_g)  [g0 | g1]
        o = s[:, 3 * H2:4 * H2]                         # [o0 | o1]
        c_new = f * c_cat + i * g                       # [c0 | c1]
        h_new = o * jnp.tanh(c_new)                     # [h0 | h1]
        return h_new, c_new

    # ---- wavefront 0 (peeled): layer-0 step 0 only, zero recurrent input ----
    h_cat, c_cat = gates(xa_scr[pl.ds(0, B), :],
                         jnp.zeros((B, H2), jnp.float32))
    h_cat = h_cat * l0_mask                             # layer-1 state stays zero
    c_cat = c_cat * l0_mask

    # ---- wavefront k in [1, S]: layer-0 step k + layer-1 step k-1 -----------
    def wavefront(k, carry):
        h_cat, c_cat = carry
        row_a = pl.multiple_of(k * B, B)
        z = xa_scr[pl.ds(row_a, B), :] + jnp.dot(
            h_cat, wbig, preferred_element_type=jnp.float32)
        h_cat, c_cat = gates(z, c_cat)
        # stash h1_{k-1} (off the carry chain) for the batched vocab projection
        row_h = pl.multiple_of((k - 1) * B, B)
        h1_scr[pl.ds(row_h, B), :] = h_cat[:, H:H2]
        return h_cat, c_cat

    # PyTorch h=None -> zero initial hidden/cell state; states live in vregs.
    lax.fori_loop(1, S + 1, wavefront, (h_cat, c_cat), unroll=True)

    # ---- single batched vocab projection + one store, off the recurrence ----
    out_ref[...] = (jnp.dot(h1_scr[...], wlin_ref[...],
                            preferred_element_type=jnp.float32)
                    + blin_ref[...])


# --------------------------------------------------------------------------- #
# Host-side weight packing
# --------------------------------------------------------------------------- #
def _interleave_gates(a, b):
    """(..., 4H) x (..., 4H) -> (..., 8H) laid out [i_a i_b f_a f_b g_a g_b o_a o_b]."""
    H = a.shape[-1] // 4
    parts = []
    for g in range(4):
        parts.append(a[..., g * H:(g + 1) * H])
        parts.append(b[..., g * H:(g + 1) * H])
    return jnp.concatenate(parts, axis=-1)


def _pack_params(p, *, hidden):
    H = hidden
    wih0_t = p["wih0"].T          # (I, 4H)
    whh0_t = p["whh0"].T          # (H, 4H)
    wih1_t = p["wih1"].T          # (H, 4H)
    whh1_t = p["whh1"].T          # (H, 4H)
    b0 = p["bih0"] + p["bhh0"]    # (4H,)
    b1 = p["bih1"] + p["bhh1"]    # (4H,)
    I = wih0_t.shape[0]

    wih0_big = _interleave_gates(wih0_t, jnp.zeros((I, 4 * H), jnp.float32))   # (I, 8H)
    b_big = _interleave_gates(b0[None, :], b1[None, :])                        # (1, 8H)
    # [h0 | h1] @ w_big:  layer-0 lanes <- h0 @ Whh0^T,  layer-1 lanes <- h0 @ Wih1^T + h1 @ Whh1^T
    w_big = jnp.concatenate(
        [_interleave_gates(whh0_t, wih1_t),
         _interleave_gates(jnp.zeros((H, 4 * H), jnp.float32), whh1_t)],
        axis=0)                                                                # (2H, 8H)
    return {"wih0_big": wih0_big, "b_big": b_big, "w_big": w_big,
            "wlin_t": p["wlin"].T, "blin": p["blin"][None, :]}


# --------------------------------------------------------------------------- #
# Wrapper
# --------------------------------------------------------------------------- #
def text_generation_forward(x, params, *, hidden):
    """x: (batch, seq, input_size) float32 -> logits (seq, batch, vocab)."""
    B, S, I = x.shape
    H = hidden
    packed = _pack_params(params, hidden=hidden)
    V = packed["wlin_t"].shape[1]

    # Time-major like PyTorch's x.transpose(0, 1), flattened to (S*B, I) so each
    # timestep's rows are contiguous, sublane-aligned slices.  One extra zero
    # block feeds the final (layer-1-only) wavefront.
    x_tm = jnp.transpose(x, (1, 0, 2)).reshape(S * B, I)
    x_pad = jnp.concatenate([x_tm, jnp.zeros((B, I), x_tm.dtype)], axis=0)

    flops = int(2 * (S + 1) * B * I * 8 * H          # input projection (all steps)
                + S * 2 * B * 2 * H * 8 * H          # fused recurrent matmul per wavefront
                + 2 * S * B * H * V)                 # vocab projection
    transcendentals = int((S + 1) * B * (8 * H + 2 * H))
    bytes_accessed = int(4 * (x_pad.size
                              + sum(int(v.size) for v in packed.values())
                              + S * B * V))

    kernel = functools.partial(_lstm_textgen_kernel, hidden=H, batch=B, seq=S)
    out_flat = pl.pallas_call(
        kernel,
        out_shape=jax.ShapeDtypeStruct((S * B, V), jnp.float32),
        in_specs=[pl.BlockSpec(memory_space=pltpu.MemorySpace.VMEM)
                  for _ in range(6)],
        out_specs=pl.BlockSpec(memory_space=pltpu.MemorySpace.VMEM),
        scratch_shapes=[
            pltpu.VMEM(((S + 1) * B, 8 * H), jnp.float32),   # input projection, all steps
            pltpu.VMEM((S * B, H), jnp.float32),             # h1 per timestep
        ],
        cost_estimate=pl.CostEstimate(flops=flops,
                                      transcendentals=transcendentals,
                                      bytes_accessed=bytes_accessed),
    )(x_pad,
      packed["wih0_big"], packed["b_big"], packed["w_big"],
      packed["wlin_t"], packed["blin"])
    # PyTorch returns (seq, batch, vocab).
    return out_flat.reshape(S, B, V)


# --------------------------------------------------------------------------- #
# Init + pure-JAX reference (PyTorch-layout weights)
# --------------------------------------------------------------------------- #
def init_params(key, *, input_size, hidden, vocab):
    """Deterministic init mimicking PyTorch nn.LSTM / nn.Linear parameter shapes."""
    ks = jax.random.split(key, 10)
    bound = 1.0 / jnp.sqrt(hidden)

    def u(k, shape):
        return jax.random.uniform(k, shape, jnp.float32, -bound, bound)

    return {
        "wih0": u(ks[0], (4 * hidden, input_size)),
        "whh0": u(ks[1], (4 * hidden, hidden)),
        "bih0": u(ks[2], (4 * hidden,)),
        "bhh0": u(ks[3], (4 * hidden,)),
        "wih1": u(ks[4], (4 * hidden, hidden)),
        "whh1": u(ks[5], (4 * hidden, hidden)),
        "bih1": u(ks[6], (4 * hidden,)),
        "bhh1": u(ks[7], (4 * hidden,)),
        "wlin": u(ks[8], (vocab, hidden)),
        "blin": u(ks[9], (vocab,)),
    }


def _reference_forward(x, p, *, hidden):
    """Pure-JAX reference of the PyTorch forward (training mode, exact tanh)."""
    xs = jnp.transpose(x, (1, 0, 2))  # (S, B, I)
    B = x.shape[0]
    H = hidden

    def run_layer(xs, wih, whh, bih, bhh):
        wih_t, whh_t, b = wih.T, whh.T, (bih + bhh)[None, :]

        def step(carry, xt):
            h, c = carry
            z = xt @ wih_t + h @ whh_t + b
            i, f, g, o = jnp.split(z, 4, axis=-1)
            i = jax.nn.sigmoid(i); f = jax.nn.sigmoid(f)
            g = jnp.tanh(g);       o = jax.nn.sigmoid(o)
            c = f * c + i * g
            h = o * jnp.tanh(c)
            return (h, c), h

        init = (jnp.zeros((B, H), jnp.float32), jnp.zeros((B, H), jnp.float32))
        _, ys = lax.scan(step, init, xs)
        return ys

    y0 = run_layer(xs, p["wih0"], p["whh0"], p["bih0"], p["bhh0"])
    y1 = run_layer(y0, p["wih1"], p["whh1"], p["bih1"], p["bhh1"])
    return y1 @ p["wlin"].T + p["blin"][None, :]


if __name__ == "__main__":
    # Small shapes consistent with the module's forward.
    batch, seq, input_size = 8, 8, 1
    hidden, vocab = 32, 32   # lstm_num_hidden=32, lstm_num_layers=2, vocabulary_size=32

    key = jax.random.PRNGKey(0)
    kx, kp = jax.random.split(key)
    x = jax.random.normal(kx, (batch, seq, input_size), jnp.float32)
    params = init_params(kp, input_size=input_size, hidden=hidden, vocab=vocab)

    out = text_generation_forward(x, params, hidden=hidden)
    out = jax.block_until_ready(out)

    ref = _reference_forward(x, params, hidden=hidden)
    assert out.shape == (seq, batch, vocab)
    assert jnp.allclose(out, ref, atol=1e-4, rtol=1e-4)

    # TODO(synk): eval-mode hidden-state caching (self.h) is host-side Python state,
    # not part of the kernel; training-mode forward (h=None) is what is implemented.
    print("KERNEL_OK")
</pallas_src>

<mosaic_0001>
module attributes {stable_mosaic.version = 11 : i64} {
  func.func @_lstm_textgen_kernel(%arg0: memref<72x1xf32, #tpu.memory_space<vmem>>, %arg1: memref<1x256xf32, #tpu.memory_space<vmem>>, %arg2: memref<1x256xf32, #tpu.memory_space<vmem>>, %arg3: memref<64x256xf32, #tpu.memory_space<vmem>>, %arg4: memref<32x32xf32, #tpu.memory_space<vmem>>, %arg5: memref<1x32xf32, #tpu.memory_space<vmem>>, %arg6: memref<64x32xf32, #tpu.memory_space<vmem>>, %arg7: memref<72x256xf32, #tpu.memory_space<vmem>>, %arg8: memref<64x32xf32, #tpu.memory_space<vmem>>) attributes {dimension_semantics = [], scalar_prefetch = 0 : i64, scratch_operands = 2 : i64, tpu.core_type = #tpu.core_type<tc>} {
    %c0 = arith.constant 0 : index
    %c0_0 = arith.constant 0 : index
    %0 = vector.load %arg3[%c0, %c0_0] : memref<64x256xf32, #tpu.memory_space<vmem>>, vector<64x256xf32>
    %1 = tpu.iota {dimensions = array<i32: 1>} : vector<1x256xi32>
    %c128_i32 = arith.constant 128 : i32
    %2 = vector.broadcast %c128_i32 : i32 to vector<1x256xi32>
    %3 = arith.cmpi sge, %1, %2 : vector<1x256xi32>
    %c192_i32 = arith.constant 192 : i32
    %4 = vector.broadcast %c192_i32 : i32 to vector<1x256xi32>
    %5 = arith.cmpi slt, %1, %4 : vector<1x256xi32>
    %6 = arith.andi %3, %5 : vector<1x256xi1>
    %cst = arith.constant 2.000000e+00 : f32
    %cst_1 = arith.constant 1.000000e+00 : f32
    %7 = vector.broadcast %cst : f32 to vector<1x256xf32>
    %8 = vector.broadcast %cst_1 : f32 to vector<1x256xf32>
    %9 = arith.select %6, %7, %8 : vector<1x256xi1>, vector<1x256xf32>
    %10 = tpu.iota {dimensions = array<i32: 1>} : vector<1x64xi32>
    %c32_i32 = arith.constant 32 : i32
    %11 = vector.broadcast %c32_i32 : i32 to vector<1x64xi32>
    %12 = arith.cmpi slt, %10, %11 : vector<1x64xi32>
    %13 = arith.extui %12 : vector<1x64xi1> to vector<1x64xi32>
    %14 = arith.sitofp %13 : vector<1x64xi32> to vector<1x64xf32>
    %c0_2 = arith.constant 0 : index
    %c0_3 = arith.constant 0 : index
    %15 = vector.load %arg0[%c0_2, %c0_3] : memref<72x1xf32, #tpu.memory_space<vmem>>, vector<72x1xf32>
    %c0_4 = arith.constant 0 : index
    %c0_5 = arith.constant 0 : index
    %16 = vector.load %arg1[%c0_4, %c0_5] : memref<1x256xf32, #tpu.memory_space<vmem>>, vector<1x256xf32>
    %cst_6 = arith.constant dense<0.000000e+00> : vector<72x256xf32>
    %17 = tpu.matmul %15, %16, %cst_6 {dimension_numbers = #tpu.dot_dimension_numbers<[1], [0], [0], [1], [0, 0, 1, 1], [], []>} : vector<72x1xf32>, vector<1x256xf32>, vector<72x256xf32> -> vector<72x256xf32>
    %c0_7 = arith.constant 0 : index
    %c0_8 = arith.constant 0 : index
    %18 = vector.load %arg2[%c0_7, %c0_8] : memref<1x256xf32, #tpu.memory_space<vmem>>, vector<1x256xf32>
    %19 = vector.broadcast %18 : vector<1x256xf32> to vector<72x256xf32>
    %20 = arith.addf %17, %19 : vector<72x256xf32>
    %c0_9 = arith.constant 0 : index
    %c0_10 = arith.constant 0 : index
    %21 = vector.load %arg7[%c0_9, %c0_10] : memref<72x256xf32, #tpu.memory_space<vmem>>, vector<72x256xf32>
    tpu.vector_store %arg7[%c0_9, %c0_10], %20 {strides = array<i32>} : memref<72x256xf32, #tpu.memory_space<vmem>>, vector<72x256xf32>,
    %c0_11 = arith.constant 0 : index
    %c0_12 = arith.constant 0 : index
    %22 = vector.load %arg7[%c0_11, %c0_12] : memref<72x256xf32, #tpu.memory_space<vmem>>, vector<8x256xf32>
    %cst_13 = arith.constant 0.000000e+00 : f32
    %23 = vector.broadcast %cst_13 : f32 to vector<8x64xf32>
    %24 = vector.broadcast %9 : vector<1x256xf32> to vector<8x256xf32>
    %25 = arith.mulf %22, %24 : vector<8x256xf32>
    %26 = arith.negf %25 : vector<8x256xf32>
    %27 = math.exp %26 : vector<8x256xf32>
    %cst_14 = arith.constant 1.000000e+00 : f32
    %28 = vector.broadcast %cst_14 : f32 to vector<8x256xf32>
    %29 = arith.addf %28, %27 : vector<8x256xf32>
    %30 = arith.divf %28, %29 : vector<8x256xf32>
    %31 = vector.extract_strided_slice %30 {offsets = [0, 0], sizes = [8, 64], strides = [1, 1]} : vector<8x256xf32> to vector<8x64xf32>
    %32 = vector.extract_strided_slice %30 {offsets = [0, 64], sizes = [8, 64], strides = [1, 1]} : vector<8x256xf32> to vector<8x64xf32>
    %33 = vector.extract_strided_slice %30 {offsets = [0, 128], sizes = [8, 64], strides = [1, 1]} : vector<8x256xf32> to vector<8x64xf32>
    %cst_15 = arith.constant 2.000000e+00 : f32
    %34 = vector.broadcast %cst_15 : f32 to vector<8x64xf32>
    %35 = arith.mulf %34, %33 : vector<8x64xf32>
    %cst_16 = arith.constant 1.000000e+00 : f32
    %36 = vector.broadcast %cst_16 : f32 to vector<8x64xf32>
    %37 = arith.subf %35, %36 : vector<8x64xf32>
    %38 = vector.extract_strided_slice %30 {offsets = [0, 192], sizes = [8, 64], strides = [1, 1]} : vector<8x256xf32> to vector<8x64xf32>
    %39 = arith.mulf %32, %23 : vector<8x64xf32>
    %40 = arith.mulf %31, %37 : vector<8x64xf32>
    %41 = arith.addf %39, %40 : vector<8x64xf32>
    %42 = math.tanh %41 : vector<8x64xf32>
    %43 = arith.mulf %38, %42 : vector<8x64xf32>
    %44 = vector.broadcast %14 : vector<1x64xf32> to vector<8x64xf32>
    %45 = arith.mulf %43, %44 : vector<8x64xf32>
    %46 = vector.broadcast %14 : vector<1x64xf32> to vector<8x64xf32>
    %47 = arith.mulf %41, %46 : vector<8x64xf32>
    %c1_i32 = arith.constant 1 : i32
    %c8_i32 = arith.constant 8 : i32
    %48 = arith.muli %c1_i32, %c8_i32 : i32
    %49 = tpu.assume_multiple %48, 8 : i32
    %50 = arith.index_cast %49 : i32 to index
    %c0_17 = arith.constant 0 : index
    %51 = vector.load %arg7[%50, %c0_17] : memref<72x256xf32, #tpu.memory_space<vmem>>, vector<8x256xf32>
    %cst_18 = arith.constant dense<0.000000e+00> : vector<8x256xf32>
    %52 = tpu.matmul %45, %0, %cst_18 {dimension_numbers = #tpu.dot_dimension_numbers<[1], [0], [0], [1], [0, 0, 1, 1], [], []>} : vector<8x64xf32>, vector<64x256xf32>, vector<8x256xf32> -> vector<8x256xf32>
    %53 = arith.addf %51, %52 : vector<8x256xf32>
    %54 = vector.broadcast %9 : vector<1x256xf32> to vector<8x256xf32>
    %55 = arith.mulf %53, %54 : vector<8x256xf32>
    %56 = arith.negf %55 : vector<8x256xf32>
    %57 = math.exp %56 : vector<8x256xf32>
    %cst_19 = arith.constant 1.000000e+00 : f32
    %58 = vector.broadcast %cst_19 : f32 to vector<8x256xf32>
    %59 = arith.addf %58, %57 : vector<8x256xf32>
    %60 = arith.divf %58, %59 : vector<8x256xf32>
    %61 = vector.extract_strided_slice %60 {offsets = [0, 0], sizes = [8, 64], strides = [1, 1]} : vector<8x256xf32> to vector<8x64xf32>
    %62 = vector.extract_strided_slice %60 {offsets = [0, 64], sizes = [8, 64], strides = [1, 1]} : vector<8x256xf32> to vector<8x64xf32>
    %63 = vector.extract_strided_slice %60 {offsets = [0, 128], sizes = [8, 64], strides = [1, 1]} : vector<8x256xf32> to vector<8x64xf32>
    %cst_20 = arith.constant 2.000000e+00 : f32
    %64 = vector.broadcast %cst_20 : f32 to vector<8x64xf32>
    %65 = arith.mulf %64, %63 : vector<8x64xf32>
    %cst_21 = arith.constant 1.000000e+00 : f32
    %66 = vector.broadcast %cst_21 : f32 to vector<8x64xf32>
    %67 = arith.subf %65, %66 : vector<8x64xf32>
    %68 = vector.extract_strided_slice %60 {offsets = [0, 192], sizes = [8, 64], strides = [1, 1]} : vector<8x256xf32> to vector<8x64xf32>
    %69 = arith.mulf %62, %47 : vector<8x64xf32>
    %70 = arith.mulf %61, %67 : vector<8x64xf32>
    %71 = arith.addf %69, %70 : vector<8x64xf32>
    %72 = math.tanh %71 : vector<8x64xf32>
    %73 = arith.mulf %68, %72 : vector<8x64xf32>
    %c1_i32_22 = arith.constant 1 : i32
    %74 = arith.subi %c1_i32, %c1_i32_22 : i32
    %c8_i32_23 = arith.constant 8 : i32
    %75 = arith.muli %74, %c8_i32_23 : i32
    %76 = tpu.assume_multiple %75, 8 : i32
    %77 = vector.extract_strided_slice %73 {offsets = [0, 32], sizes = [8, 32], strides = [1, 1]} : vector<8x64xf32> to vector<8x32xf32>
    %78 = arith.index_cast %76 : i32 to index
    %c0_24 = arith.constant 0 : index
    %79 = vector.load %arg8[%78, %c0_24] : memref<64x32xf32, #tpu.memory_space<vmem>>, vector<8x32xf32>
    tpu.vector_store %arg8[%78, %c0_24], %77 {strides = array<i32>} : memref<64x32xf32, #tpu.memory_space<vmem>>, vector<8x32xf32>,
    %c2_i32 = arith.constant 2 : i32
    %c8_i32_25 = arith.constant 8 : i32
    %80 = arith.muli %c2_i32, %c8_i32_25 : i32
    %81 = tpu.assume_multiple %80, 8 : i32
    %82 = arith.index_cast %81 : i32 to index
    %c0_26 = arith.constant 0 : index
    %83 = vector.load %arg7[%82, %c0_26] : memref<72x256xf32, #tpu.memory_space<vmem>>, vector<8x256xf32>
    %cst_27 = arith.constant dense<0.000000e+00> : vector<8x256xf32>
    %84 = tpu.matmul %73, %0, %cst_27 {dimension_numbers = #tpu.dot_dimension_numbers<[1], [0], [0], [1], [0, 0, 1, 1], [], []>} : vector<8x64xf32>, vector<64x256xf32>, vector<8x256xf32> -> vector<8x256xf32>
    %85 = arith.addf %83, %84 : vector<8x256xf32>
    %86 = vector.broadcast %9 : vector<1x256xf32> to vector<8x256xf32>
    %87 = arith.mulf %85, %86 : vector<8x256xf32>
    %88 = arith.negf %87 : vector<8x256xf32>
    %89 = math.exp %88 : vector<8x256xf32>
    %cst_28 = arith.constant 1.000000e+00 : f32
    %90 = vector.broadcast %cst_28 : f32 to vector<8x256xf32>
    %91 = arith.addf %90, %89 : vector<8x256xf32>
    %92 = arith.divf %90, %91 : vector<8x256xf32>
    %93 = vector.extract_strided_slice %92 {offsets = [0, 0], sizes = [8, 64], strides = [1, 1]} : vector<8x256xf32> to vector<8x64xf32>
    %94 = vector.extract_strided_slice %92 {offsets = [0, 64], sizes = [8, 64], strides = [1, 1]} : vector<8x256xf32> to vector<8x64xf32>
    %95 = vector.extract_strided_slice %92 {offsets = [0, 128], sizes = [8, 64], strides = [1, 1]} : vector<8x256xf32> to vector<8x64xf32>
    %cst_29 = arith.constant 2.000000e+00 : f32
    %96 = vector.broadcast %cst_29 : f32 to vector<8x64xf32>
    %97 = arith.mulf %96, %95 : vector<8x64xf32>
    %cst_30 = arith.constant 1.000000e+00 : f32
    %98 = vector.broadcast %cst_30 : f32 to vector<8x64xf32>
    %99 = arith.subf %97, %98 : vector<8x64xf32>
    %100 = vector.extract_strided_slice %92 {offsets = [0, 192], sizes = [8, 64], strides = [1, 1]} : vector<8x256xf32> to vector<8x64xf32>
    %101 = arith.mulf %94, %71 : vector<8x64xf32>
    %102 = arith.mulf %93, %99 : vector<8x64xf32>
    %103 = arith.addf %101, %102 : vector<8x64xf32>
    %104 = math.tanh %103 : vector<8x64xf32>
    %105 = arith.mulf %100, %104 : vector<8x64xf32>
    %c1_i32_31 = arith.constant 1 : i32
    %106 = arith.subi %c2_i32, %c1_i32_31 : i32
    %c8_i32_32 = arith.constant 8 : i32
    %107 = arith.muli %106, %c8_i32_32 : i32
    %108 = tpu.assume_multiple %107, 8 : i32
    %109 = vector.extract_strided_slice %105 {offsets = [0, 32], sizes = [8, 32], strides = [1, 1]} : vector<8x64xf32> to vector<8x32xf32>
    %110 = arith.index_cast %108 : i32 to index
    %c0_33 = arith.constant 0 : index
    %111 = vector.load %arg8[%110, %c0_33] : memref<64x32xf32, #tpu.memory_space<vmem>>, vector<8x32xf32>
    tpu.vector_store %arg8[%110, %c0_33], %109 {strides = array<i32>} : memref<64x32xf32, #tpu.memory_space<vmem>>, vector<8x32xf32>,
    %c3_i32 = arith.constant 3 : i32
    %c8_i32_34 = arith.constant 8 : i32
    %112 = arith.muli %c3_i32, %c8_i32_34 : i32
    %113 = tpu.assume_multiple %112, 8 : i32
    %114 = arith.index_cast %113 : i32 to index
    %c0_35 = arith.constant 0 : index
    %115 = vector.load %arg7[%114, %c0_35] : memref<72x256xf32, #tpu.memory_space<vmem>>, vector<8x256xf32>
    %cst_36 = arith.constant dense<0.000000e+00> : vector<8x256xf32>
    %116 = tpu.matmul %105, %0, %cst_36 {dimension_numbers = #tpu.dot_dimension_numbers<[1], [0], [0], [1], [0, 0, 1, 1], [], []>} : vector<8x64xf32>, vector<64x256xf32>, vector<8x256xf32> -> vector<8x256xf32>
    %117 = arith.addf %115, %116 : vector<8x256xf32>
    %118 = vector.broadcast %9 : vector<1x256xf32> to vector<8x256xf32>
    %119 = arith.mulf %117, %118 : vector<8x256xf32>
    %120 = arith.negf %119 : vector<8x256xf32>
    %121 = math.exp %120 : vector<8x256xf32>
    %cst_37 = arith.constant 1.000000e+00 : f32
    %122 = vector.broadcast %cst_37 : f32 to vector<8x256xf32>
    %123 = arith.addf %122, %121 : vector<8x256xf32>
    %124 = arith.divf %122, %123 : vector<8x256xf32>
    %125 = vector.extract_strided_slice %124 {offsets = [0, 0], sizes = [8, 64], strides = [1, 1]} : vector<8x256xf32> to vector<8x64xf32>
    %126 = vector.extract_strided_slice %124 {offsets = [0, 64], sizes = [8, 64], strides = [1, 1]} : vector<8x256xf32> to vector<8x64xf32>
    %127 = vector.extract_strided_slice %124 {offsets = [0, 128], sizes = [8, 64], strides = [1, 1]} : vector<8x256xf32> to vector<8x64xf32>
    %cst_38 = arith.constant 2.000000e+00 : f32
    %128 = vector.broadcast %cst_38 : f32 to vector<8x64xf32>
    %129 = arith.mulf %128, %127 : vector<8x64xf32>
    %cst_39 = arith.constant 1.000000e+00 : f32
    %130 = vector.broadcast %cst_39 : f32 to vector<8x64xf32>
    %131 = arith.subf %129, %130 : vector<8x64xf32>
    %132 = vector.extract_strided_slice %124 {offsets = [0, 192], sizes = [8, 64], strides = [1, 1]} : vector<8x256xf32> to vector<8x64xf32>
    %133 = arith.mulf %126, %103 : vector<8x64xf32>
    %134 = arith.mulf %125, %131 : vector<8x64xf32>
    %135 = arith.addf %133, %134 : vector<8x64xf32>
    %136 = math.tanh %135 : vector<8x64xf32>
    %137 = arith.mulf %132, %136 : vector<8x64xf32>
    %c1_i32_40 = arith.constant 1 : i32
    %138 = arith.subi %c3_i32, %c1_i32_40 : i32
    %c8_i32_41 = arith.constant 8 : i32
    %139 = arith.muli %138, %c8_i32_41 : i32
    %140 = tpu.assume_multiple %139, 8 : i32
    %141 = vector.extract_strided_slice %137 {offsets = [0, 32], sizes = [8, 32], strides = [1, 1]} : vector<8x64xf32> to vector<8x32xf32>
    %142 = arith.index_cast %140 : i32 to index
    %c0_42 = arith.constant 0 : index
    %143 = vector.load %arg8[%142, %c0_42] : memref<64x32xf32, #tpu.memory_space<vmem>>, vector<8x32xf32>
    tpu.vector_store %arg8[%142, %c0_42], %141 {strides = array<i32>} : memref<64x32xf32, #tpu.memory_space<vmem>>, vector<8x32xf32>,
    %c4_i32 = arith.constant 4 : i32
    %c8_i32_43 = arith.constant 8 : i32
    %144 = arith.muli %c4_i32, %c8_i32_43 : i32
    %145 = tpu.assume_multiple %144, 8 : i32
    %146 = arith.index_cast %145 : i32 to index
    %c0_44 = arith.constant 0 : index
    %147 = vector.load %arg7[%146, %c0_44] : memref<72x256xf32, #tpu.memory_space<vmem>>, vector<8x256xf32>
    %cst_45 = arith.constant dense<0.000000e+00> : vector<8x256xf32>
    %148 = tpu.matmul %137, %0, %cst_45 {dimension_numbers = #tpu.dot_dimension_numbers<[1], [0], [0], [1], [0, 0, 1, 1], [], []>} : vector<8x64xf32>, vector<64x256xf32>, vector<8x256xf32> -> vector<8x256xf32>
    %149 = arith.addf %147, %148 : vector<8x256xf32>
    %150 = vector.broadcast %9 : vector<1x256xf32> to vector<8x256xf32>
    %151 = arith.mulf %149, %150 : vector<8x256xf32>
    %152 = arith.negf %151 : vector<8x256xf32>
    %153 = math.exp %152 : vector<8x256xf32>
    %cst_46 = arith.constant 1.000000e+00 : f32
    %154 = vector.broadcast %cst_46 : f32 to vector<8x256xf32>
    %155 = arith.addf %154, %153 : vector<8x256xf32>
    %156 = arith.divf %154, %155 : vector<8x256xf32>
    %157 = vector.extract_strided_slice %156 {offsets = [0, 0], sizes = [8, 64], strides = [1, 1]} : vector<8x256xf32> to vector<8x64xf32>
    %158 = vector.extract_strided_slice %156 {offsets = [0, 64], sizes = [8, 64], strides = [1, 1]} : vector<8x256xf32> to vector<8x64xf32>
    %159 = vector.extract_strided_slice %156 {offsets = [0, 128], sizes = [8, 64], strides = [1, 1]} : vector<8x256xf32> to vector<8x64xf32>
    %cst_47 = arith.constant 2.000000e+00 : f32
    %160 = vector.broadcast %cst_47 : f32 to vector<8x64xf32>
    %161 = arith.mulf %160, %159 : vector<8x64xf32>
    %cst_48 = arith.constant 1.000000e+00 : f32
    %162 = vector.broadcast %cst_48 : f32 to vector<8x64xf32>
    %163 = arith.subf %161, %162 : vector<8x64xf32>
    %164 = vector.extract_strided_slice %156 {offsets = [0, 192], sizes = [8, 64], strides = [1, 1]} : vector<8x256xf32> to vector<8x64xf32>
    %165 = arith.mulf %158, %135 : vector<8x64xf32>
    %166 = arith.mulf %157, %163 : vector<8x64xf32>
    %167 = arith.addf %165, %166 : vector<8x64xf32>
    %168 = math.tanh %167 : vector<8x64xf32>
    %169 = arith.mulf %164, %168 : vector<8x64xf32>
    %c1_i32_49 = arith.constant 1 : i32
    %170 = arith.subi %c4_i32, %c1_i32_49 : i32
    %c8_i32_50 = arith.constant 8 : i32
    %171 = arith.muli %170, %c8_i32_50 : i32
    %172 = tpu.assume_multiple %171, 8 : i32
    %173 = vector.extract_strided_slice %169 {offsets = [0, 32], sizes = [8, 32], strides = [1, 1]} : vector<8x64xf32> to vector<8x32xf32>
    %174 = arith.index_cast %172 : i32 to index
    %c0_51 = arith.constant 0 : index
    %175 = vector.load %arg8[%174, %c0_51] : memref<64x32xf32, #tpu.memory_space<vmem>>, vector<8x32xf32>
    tpu.vector_store %arg8[%174, %c0_51], %173 {strides = array<i32>} : memref<64x32xf32, #tpu.memory_space<vmem>>, vector<8x32xf32>,
    %c5_i32 = arith.constant 5 : i32
    %c8_i32_52 = arith.constant 8 : i32
    %176 = arith.muli %c5_i32, %c8_i32_52 : i32
    %177 = tpu.assume_multiple %176, 8 : i32
    %178 = arith.index_cast %177 : i32 to index
    %c0_53 = arith.constant 0 : index
    %179 = vector.load %arg7[%178, %c0_53] : memref<72x256xf32, #tpu.memory_space<vmem>>, vector<8x256xf32>
    %cst_54 = arith.constant dense<0.000000e+00> : vector<8x256xf32>
    %180 = tpu.matmul %169, %0, %cst_54 {dimension_numbers = #tpu.dot_dimension_numbers<[1], [0], [0], [1], [0, 0, 1, 1], [], []>} : vector<8x64xf32>, vector<64x256xf32>, vector<8x256xf32> -> vector<8x256xf32>
    %181 = arith.addf %179, %180 : vector<8x256xf32>
    %182 = vector.broadcast %9 : vector<1x256xf32> to vector<8x256xf32>
    %183 = arith.mulf %181, %182 : vector<8x256xf32>
    %184 = arith.negf %183 : vector<8x256xf32>
    %185 = math.exp %184 : vector<8x256xf32>
    %cst_55 = arith.constant 1.000000e+00 : f32
    %186 = vector.broadcast %cst_55 : f32 to vector<8x256xf32>
    %187 = arith.addf %186, %185 : vector<8x256xf32>
    %188 = arith.divf %186, %187 : vector<8x256xf32>
    %189 = vector.extract_strided_slice %188 {offsets = [0, 0], sizes = [8, 64], strides = [1, 1]} : vector<8x256xf32> to vector<8x64xf32>
    %190 = vector.extract_strided_slice %188 {offsets = [0, 64], sizes = [8, 64], strides = [1, 1]} : vector<8x256xf32> to vector<8x64xf32>
    %191 = vector.extract_strided_slice %188 {offsets = [0, 128], sizes = [8, 64], strides = [1, 1]} : vector<8x256xf32> to vector<8x64xf32>
    %cst_56 = arith.constant 2.000000e+00 : f32
    %192 = vector.broadcast %cst_56 : f32 to vector<8x64xf32>
    %193 = arith.mulf %192, %191 : vector<8x64xf32>
    %cst_57 = arith.constant 1.000000e+00 : f32
    %194 = vector.broadcast %cst_57 : f32 to vector<8x64xf32>
    %195 = arith.subf %193, %194 : vector<8x64xf32>
    %196 = vector.extract_strided_slice %188 {offsets = [0, 192], sizes = [8, 64], strides = [1, 1]} : vector<8x256xf32> to vector<8x64xf32>
    %197 = arith.mulf %190, %167 : vector<8x64xf32>
    %198 = arith.mulf %189, %195 : vector<8x64xf32>
    %199 = arith.addf %197, %198 : vector<8x64xf32>
    %200 = math.tanh %199 : vector<8x64xf32>
    %201 = arith.mulf %196, %200 : vector<8x64xf32>
    %c1_i32_58 = arith.constant 1 : i32
    %202 = arith.subi %c5_i32, %c1_i32_58 : i32
    %c8_i32_59 = arith.constant 8 : i32
    %203 = arith.muli %202, %c8_i32_59 : i32
    %204 = tpu.assume_multiple %203, 8 : i32
    %205 = vector.extract_strided_slice %201 {offsets = [0, 32], sizes = [8, 32], strides = [1, 1]} : vector<8x64xf32> to vector<8x32xf32>
    %206 = arith.index_cast %204 : i32 to index
    %c0_60 = arith.constant 0 : index
    %207 = vector.load %arg8[%206, %c0_60] : memref<64x32xf32, #tpu.memory_space<vmem>>, vector<8x32xf32>
    tpu.vector_store %arg8[%206, %c0_60], %205 {strides = array<i32>} : memref<64x32xf32, #tpu.memory_space<vmem>>, vector<8x32xf32>,
    %c6_i32 = arith.constant 6 : i32
    %c8_i32_61 = arith.constant 8 : i32
    %208 = arith.muli %c6_i32, %c8_i32_61 : i32
    %209 = tpu.assume_multiple %208, 8 : i32
    %210 = arith.index_cast %209 : i32 to index
    %c0_62 = arith.constant 0 : index
    %211 = vector.load %arg7[%210, %c0_62] : memref<72x256xf32, #tpu.memory_space<vmem>>, vector<8x256xf32>
    %cst_63 = arith.constant dense<0.000000e+00> : vector<8x256xf32>
    %212 = tpu.matmul %201, %0, %cst_63 {dimension_numbers = #tpu.dot_dimension_numbers<[1], [0], [0], [1], [0, 0, 1, 1], [], []>} : vector<8x64xf32>, vector<64x256xf32>, vector<8x256xf32> -> vector<8x256xf32>
    %213 = arith.addf %211, %212 : vector<8x256xf32>
    %214 = vector.broadcast %9 : vector<1x256xf32> to vector<8x256xf32>
    %215 = arith.mulf %213, %214 : vector<8x256xf32>
    %216 = arith.negf %215 : vector<8x256xf32>
    %217 = math.exp %216 : vector<8x256xf32>
    %cst_64 = arith.constant 1.000000e+00 : f32
    %218 = vector.broadcast %cst_64 : f32 to vector<8x256xf32>
    %219 = arith.addf %218, %217 : vector<8x256xf32>
    %220 = arith.divf %218, %219 : vector<8x256xf32>
    %221 = vector.extract_strided_slice %220 {offsets = [0, 0], sizes = [8, 64], strides = [1, 1]} : vector<8x256xf32> to vector<8x64xf32>
    %222 = vector.extract_strided_slice %220 {offsets = [0, 64], sizes = [8, 64], strides = [1, 1]} : vector<8x256xf32> to vector<8x64xf32>
    %223 = vector.extract_strided_slice %220 {offsets = [0, 128], sizes = [8, 64], strides = [1, 1]} : vector<8x256xf32> to vector<8x64xf32>
    %cst_65 = arith.constant 2.000000e+00 : f32
    %224 = vector.broadcast %cst_65 : f32 to vector<8x64xf32>
    %225 = arith.mulf %224, %223 : vector<8x64xf32>
    %cst_66 = arith.constant 1.000000e+00 : f32
    %226 = vector.broadcast %cst_66 : f32 to vector<8x64xf32>
    %227 = arith.subf %225, %226 : vector<8x64xf32>
    %228 = vector.extract_strided_slice %220 {offsets = [0, 192], sizes = [8, 64], strides = [1, 1]} : vector<8x256xf32> to vector<8x64xf32>
    %229 = arith.mulf %222, %199 : vector<8x64xf32>
    %230 = arith.mulf %221, %227 : vector<8x64xf32>
    %231 = arith.addf %229, %230 : vector<8x64xf32>
    %232 = math.tanh %231 : vector<8x64xf32>
    %233 = arith.mulf %228, %232 : vector<8x64xf32>
    %c1_i32_67 = arith.constant 1 : i32
    %234 = arith.subi %c6_i32, %c1_i32_67 : i32
    %c8_i32_68 = arith.constant 8 : i32
    %235 = arith.muli %234, %c8_i32_68 : i32
    %236 = tpu.assume_multiple %235, 8 : i32
    %237 = vector.extract_strided_slice %233 {offsets = [0, 32], sizes = [8, 32], strides = [1, 1]} : vector<8x64xf32> to vector<8x32xf32>
    %238 = arith.index_cast %236 : i32 to index
    %c0_69 = arith.constant 0 : index
    %239 = vector.load %arg8[%238, %c0_69] : memref<64x32xf32, #tpu.memory_space<vmem>>, vector<8x32xf32>
    tpu.vector_store %arg8[%238, %c0_69], %237 {strides = array<i32>} : memref<64x32xf32, #tpu.memory_space<vmem>>, vector<8x32xf32>,
    %c7_i32 = arith.constant 7 : i32
    %c8_i32_70 = arith.constant 8 : i32
    %240 = arith.muli %c7_i32, %c8_i32_70 : i32
    %241 = tpu.assume_multiple %240, 8 : i32
    %242 = arith.index_cast %241 : i32 to index
    %c0_71 = arith.constant 0 : index
    %243 = vector.load %arg7[%242, %c0_71] : memref<72x256xf32, #tpu.memory_space<vmem>>, vector<8x256xf32>
    %cst_72 = arith.constant dense<0.000000e+00> : vector<8x256xf32>
    %244 = tpu.matmul %233, %0, %cst_72 {dimension_numbers = #tpu.dot_dimension_numbers<[1], [0], [0], [1], [0, 0, 1, 1], [], []>} : vector<8x64xf32>, vector<64x256xf32>, vector<8x256xf32> -> vector<8x256xf32>
    %245 = arith.addf %243, %244 : vector<8x256xf32>
    %246 = vector.broadcast %9 : vector<1x256xf32> to vector<8x256xf32>
    %247 = arith.mulf %245, %246 : vector<8x256xf32>
    %248 = arith.negf %247 : vector<8x256xf32>
    %249 = math.exp %248 : vector<8x256xf32>
    %cst_73 = arith.constant 1.000000e+00 : f32
    %250 = vector.broadcast %cst_73 : f32 to vector<8x256xf32>
    %251 = arith.addf %250, %249 : vector<8x256xf32>
    %252 = arith.divf %250, %251 : vector<8x256xf32>
    %253 = vector.extract_strided_slice %252 {offsets = [0, 0], sizes = [8, 64], strides = [1, 1]} : vector<8x256xf32> to vector<8x64xf32>
    %254 = vector.extract_strided_slice %252 {offsets = [0, 64], sizes = [8, 64], strides = [1, 1]} : vector<8x256xf32> to vector<8x64xf32>
    %255 = vector.extract_strided_slice %252 {offsets = [0, 128], sizes = [8, 64], strides = [1, 1]} : vector<8x256xf32> to vector<8x64xf32>
    %cst_74 = arith.constant 2.000000e+00 : f32
    %256 = vector.broadcast %cst_74 : f32 to vector<8x64xf32>
    %257 = arith.mulf %256, %255 : vector<8x64xf32>
    %cst_75 = arith.constant 1.000000e+00 : f32
    %258 = vector.broadcast %cst_75 : f32 to vector<8x64xf32>
    %259 = arith.subf %257, %258 : vector<8x64xf32>
    %260 = vector.extract_strided_slice %252 {offsets = [0, 192], sizes = [8, 64], strides = [1, 1]} : vector<8x256xf32> to vector<8x64xf32>
    %261 = arith.mulf %254, %231 : vector<8x64xf32>
    %262 = arith.mulf %253, %259 : vector<8x64xf32>
    %263 = arith.addf %261, %262 : vector<8x64xf32>
    %264 = math.tanh %263 : vector<8x64xf32>
    %265 = arith.mulf %260, %264 : vector<8x64xf32>
    %c1_i32_76 = arith.constant 1 : i32
    %266 = arith.subi %c7_i32, %c1_i32_76 : i32
    %c8_i32_77 = arith.constant 8 : i32
    %267 = arith.muli %266, %c8_i32_77 : i32
    %268 = tpu.assume_multiple %267, 8 : i32
    %269 = vector.extract_strided_slice %265 {offsets = [0, 32], sizes = [8, 32], strides = [1, 1]} : vector<8x64xf32> to vector<8x32xf32>
    %270 = arith.index_cast %268 : i32 to index
    %c0_78 = arith.constant 0 : index
    %271 = vector.load %arg8[%270, %c0_78] : memref<64x32xf32, #tpu.memory_space<vmem>>, vector<8x32xf32>
    tpu.vector_store %arg8[%270, %c0_78], %269 {strides = array<i32>} : memref<64x32xf32, #tpu.memory_space<vmem>>, vector<8x32xf32>,
    %c8_i32_79 = arith.constant 8 : i32
    %c8_i32_80 = arith.constant 8 : i32
    %272 = arith.muli %c8_i32_79, %c8_i32_80 : i32
    %273 = tpu.assume_multiple %272, 8 : i32
    %274 = arith.index_cast %273 : i32 to index
    %c0_81 = arith.constant 0 : index
    %275 = vector.load %arg7[%274, %c0_81] : memref<72x256xf32, #tpu.memory_space<vmem>>, vector<8x256xf32>
    %cst_82 = arith.constant dense<0.000000e+00> : vector<8x256xf32>
    %276 = tpu.matmul %265, %0, %cst_82 {dimension_numbers = #tpu.dot_dimension_numbers<[1], [0], [0], [1], [0, 0, 1, 1], [], []>} : vector<8x64xf32>, vector<64x256xf32>, vector<8x256xf32> -> vector<8x256xf32>
    %277 = arith.addf %275, %276 : vector<8x256xf32>
    %278 = vector.broadcast %9 : vector<1x256xf32> to vector<8x256xf32>
    %279 = arith.mulf %277, %278 : vector<8x256xf32>
    %280 = arith.negf %279 : vector<8x256xf32>
    %281 = math.exp %280 : vector<8x256xf32>
    %cst_83 = arith.constant 1.000000e+00 : f32
    %282 = vector.broadcast %cst_83 : f32 to vector<8x256xf32>
    %283 = arith.addf %282, %281 : vector<8x256xf32>
    %284 = arith.divf %282, %283 : vector<8x256xf32>
    %285 = vector.extract_strided_slice %284 {offsets = [0, 0], sizes = [8, 64], strides = [1, 1]} : vector<8x256xf32> to vector<8x64xf32>
    %286 = vector.extract_strided_slice %284 {offsets = [0, 64], sizes = [8, 64], strides = [1, 1]} : vector<8x256xf32> to vector<8x64xf32>
    %287 = vector.extract_strided_slice %284 {offsets = [0, 128], sizes = [8, 64], strides = [1, 1]} : vector<8x256xf32> to vector<8x64xf32>
    %cst_84 = arith.constant 2.000000e+00 : f32
    %288 = vector.broadcast %cst_84 : f32 to vector<8x64xf32>
    %289 = arith.mulf %288, %287 : vector<8x64xf32>
    %cst_85 = arith.constant 1.000000e+00 : f32
    %290 = vector.broadcast %cst_85 : f32 to vector<8x64xf32>
    %291 = arith.subf %289, %290 : vector<8x64xf32>
    %292 = vector.extract_strided_slice %284 {offsets = [0, 192], sizes = [8, 64], strides = [1, 1]} : vector<8x256xf32> to vector<8x64xf32>
    %293 = arith.mulf %286, %263 : vector<8x64xf32>
    %294 = arith.mulf %285, %291 : vector<8x64xf32>
    %295 = arith.addf %293, %294 : vector<8x64xf32>
    %296 = math.tanh %295 : vector<8x64xf32>
    %297 = arith.mulf %292, %296 : vector<8x64xf32>
    %c1_i32_86 = arith.constant 1 : i32
    %298 = arith.subi %c8_i32_79, %c1_i32_86 : i32
    %c8_i32_87 = arith.constant 8 : i32
    %299 = arith.muli %298, %c8_i32_87 : i32
    %300 = tpu.assume_multiple %299, 8 : i32
    %301 = vector.extract_strided_slice %297 {offsets = [0, 32], sizes = [8, 32], strides = [1, 1]} : vector<8x64xf32> to vector<8x32xf32>
    %302 = arith.index_cast %300 : i32 to index
    %c0_88 = arith.constant 0 : index
    %303 = vector.load %arg8[%302, %c0_88] : memref<64x32xf32, #tpu.memory_space<vmem>>, vector<8x32xf32>
    tpu.vector_store %arg8[%302, %c0_88], %301 {strides = array<i32>} : memref<64x32xf32, #tpu.memory_space<vmem>>, vector<8x32xf32>,
    %c8_i32_89 = arith.constant 8 : i32
    %c0_90 = arith.constant 0 : index
    %c0_91 = arith.constant 0 : index
    %304 = vector.load %arg8[%c0_90, %c0_91] : memref<64x32xf32, #tpu.memory_space<vmem>>, vector<64x32xf32>
    %c0_92 = arith.constant 0 : index
    %c0_93 = arith.constant 0 : index
    %305 = vector.load %arg4[%c0_92, %c0_93] : memref<32x32xf32, #tpu.memory_space<vmem>>, vector<32x32xf32>
    %cst_94 = arith.constant dense<0.000000e+00> : vector<64x32xf32>
    %306 = tpu.matmul %304, %305, %cst_94 {dimension_numbers = #tpu.dot_dimension_numbers<[1], [0], [0], [1], [0, 0, 1, 1], [], []>} : vector<64x32xf32>, vector<32x32xf32>, vector<64x32xf32> -> vector<64x32xf32>
    %c0_95 = arith.constant 0 : index
    %c0_96 = arith.constant 0 : index
    %307 = vector.load %arg5[%c0_95, %c0_96] : memref<1x32xf32, #tpu.memory_space<vmem>>, vector<1x32xf32>
    %308 = vector.broadcast %307 : vector<1x32xf32> to vector<64x32xf32>
    %309 = arith.addf %306, %308 : vector<64x32xf32>
    %c0_97 = arith.constant 0 : index
    %c0_98 = arith.constant 0 : index
    %310 = vector.load %arg6[%c0_97, %c0_98] : memref<64x32xf32, #tpu.memory_space<vmem>>, vector<64x32xf32>
    tpu.vector_store %arg6[%c0_97, %c0_98], %309 {strides = array<i32>} : memref<64x32xf32, #tpu.memory_space<vmem>>, vector<64x32xf32>,
    return
  }
}

</mosaic_0001>

<bundles_post_ra>
// kernel: tpu_custom_call.1
= control target key start
LH: loop header
LB: loop body
LE: loop exit
PB: predicated region body
PF: predicated region fallthrough
CT: control target
= control target key end

     0   :  { %11 = vsyncpa [#allocation5], 0  ;;  %s1453_s24 = smov [#allocation4]   ;;  %s1454_s26 = smov 256   ;;  %s1971_s0 = inlined_call_operand.vmem [shape: f32[72,1], index: 0, kind: input, shape index: {}]   ;;  %s1972_s1 = inlined_call_operand.vmem [shape: f32[1,256], index: 1, kind: input, shape index: {}]   ;;  %s1973_s2 = inlined_call_operand.vmem [shape: f32[1,256], index: 2, kind: input, shape index: {}]   ;;  %s1974_s3 = inlined_call_operand.hbm [shape: f32[64,256], index: 3, kind: input, shape index: {}]   ;;  %s1975_s4 = inlined_call_operand.vmem [shape: f32[32,32], index: 4, kind: input, shape index: {}]   ;;  %s1976_s5 = inlined_call_operand.vmem [shape: f32[1,32], index: 5, kind: input, shape index: {}]   ;;  %s1977_s6 = inlined_call_operand.vmem [shape: f32[64,32], index: 6, kind: output, shape index: {}]  }
   0x1   :  { %s22_s23 = sshll.u32 %s1974_s3, 4  ;;  %s24_s25 = sshll.u32 %s1453_s24, 4  ;;  %s23_s23 = int_to_ptr.hbm [resolvable:$true] %s22_s23  ;;  %s25_s25 = int_to_ptr.vmem [resolvable:$true] %s24_s25 }
   0x2   :  { %s1455_s27 = smov 16  }
   0x3   :  { %30 = dma.hbm_to_vmem [thread:$0]  %s23_s23, 2048, %s25_s25, [#allocation5], %s1454_s26, %s1454_s26, %s1455_s27  }
   0x4   :  { %1451 = dma.done.wait [#allocation5], 2048  }
   0x5   :  { %1452 = vsyncadd [#allocation5], 4294965248  ;;  %v78_v0 = vld [vmem:[%s1972_s1] sm:$0x3]  ;;  %vm116_vm0 = vcmask 1040384   ;;  %v1504_v2 = vld [vmem:[%s1971_s0 + $0x10] sm:$0xff]  ;;  %v55_v10 = vlaneseq }
   0x6   :  { %v86_v1 = vperm.slane %v78_v0, 0  ;;  %vm88_vm1 = vcmask 7168   ;;  %v87_v3 = vperm.slane %v78_v0, 1  ;;  %v69_v4 = vld [vmem:[%s1971_s0] sm:$0xff]  ;;  %v1515_v5 = vld [vmem:[%s1971_s0 + $0x18] sm:$0xff]  ;;  %v1456_v17 = vmov 1.0  }
   0x7   :  { %v79_v6 = vld [vmem:[%s1973_s2] sm:$0x3]  ;;  %v56_v12 = vand.u32 127, %v55_v10  ;;  %s1457_s2 = smov 64   ;;  %v1458_v50 = vmov 0.0   ;;  %v1546_v53 = vld [vmem:[#allocation4 + $0x70] sm:$0xff] }
   0x8   :  { %1326 = vmatpush.msk.msra.mxu1 %vm116_vm0, %v86_v1  ;;  %1255 = vmatpush.msk.msra.mxu0 %vm116_vm0, %v86_v1  ;;  %v1525_v9 = vperm.slane %v79_v6, 0  ;;  %v1530_v16 = vperm.slane %v79_v6, 1  ;;  %v1544_v52 = vld [vmem:[%s1971_s0 + $0x20] sm:$0xff]  ;;  %v1553_v54 = vld [vmem:[%s1971_s0 + $0x38] sm:$0xff]  ;;  %v1563_v57 = vld [vmem:[#allocation4 + $0x68] sm:$0xff]  ;;  %vm294_vm12 = vcmask 523264  }
   0x9   :  { %1258 = vmatmul.msk.f32.vlgmr.msra.gmra.mxu1 %vm88_vm1, %v1504_v2  ;;  %1256 = vmatmul.msk.f32.vlgmr.msra.gmra.mxu0 %vm88_vm1, %v69_v4  ;;  %v57_v15 = vadd.s32 128, %v56_v12  ;;  %vm66_vm11 = vcmp.lt.s32.totalorder %v56_v12, 32  ;;  %v1555_v55 = vld [vmem:[#allocation4 + $0x78] sm:$0xff]  ;;  %v1557_v56 = vld [vmem:[#allocation4 + $0x60] sm:$0xff]  ;;  %v1566_v58 = vld [vmem:[#allocation4 + $0x50] sm:$0xff] }
   0xa   :  { %1265 = vmatpush.msk.msrb.mxu1 %vm116_vm0, %v87_v3  ;;  %1327 = vmatpush.msk.msra.mxu2 %vm116_vm0, %v86_v1  ;;  %v1254_v51 = vsel %vm66_vm11, 1.0, %v1458_v50  ;;  %v1570_v59 = vld [vmem:[#allocation4 + $0x58] sm:$0xff]  ;;  %v1574_v60 = vld [vmem:[#allocation4 + $0x40] sm:$0xff]  ;;  %v1580_v61 = vld [vmem:[%s1971_s0 + $0x28] sm:$0xff] }
   0xb   :  { %1328 = vmatpush.msk.msra.mxu3 %vm116_vm0, %v86_v1  ;;  %vm61_vm2 = vcmp.lt.s32.totalorder %v57_v15, 192  ;;  %1260 = vmatmul.msk.f32.vlgmr.msra.gmra.mxu2 %vm88_vm1, %v1544_v52  ;;  %v1583_v62 = vld [vmem:[#allocation4 + $0x48] sm:$0xff]  ;;  %v1590_v63 = vld [vmem:[%s1971_s0 + $0x40] sm:$0xff]  ;;  %v1592_v0 = vld [vmem:[#allocation4 + $0x30] sm:$0xff] }
   0xc   :  { %v1532_v18 = vsel %vm61_vm2, 2.0, %v1456_v17  ;;  %737 = vmatpush.msrb.mxu0 %v1546_v53  ;;  %305 = vmatpush.msrb.mxu2 %v1546_v53  ;;  %v1596_v1 = vld [vmem:[#allocation4 + $0x38] sm:$0xff]  ;;  %v1602_v3 = vld [vmem:[#allocation4 + $0x20] sm:$0xff]  ;;  %v1610_v6 = vld [vmem:[#allocation4 + $0x10] sm:$0xff] }
   0xd   :  { %1263 = vmatmul.msk.f32.vlgmr.msra.gmra.mxu3 %vm88_vm1, %v1553_v54  ;;  %757 = vmatpush.msra.mxu1 %v1555_v55  ;;  %v1622_v10 = vld [vmem:[%s1971_s0 + $0x30] sm:$0xff] }
   0xe   :  { %325 = vmatpush.msrb.mxu3 %v1555_v55  ;;  %306 = vmatpush.msrb.mxu2 %v1557_v56 }
   0xf   :  { %738 = vmatpush.msrb.mxu0 %v1557_v56  ;;  %758 = vmatpush.msra.mxu1 %v1563_v57 }
  0x10   :  { %326 = vmatpush.msrb.mxu3 %v1563_v57  ;;  %307 = vmatpush.msrb.mxu2 %v1566_v58 }
  0x11   :  { %1259 = vmatmul.msk.f32.gmra.mxu1 %vm88_vm1, %v1515_v5  ;;  %739 = vmatpush.msrb.mxu0 %v1566_v58 }
  0x12   :  { %327 = vmatpush.msrb.mxu3 %v1570_v59  ;;  %759 = vmatpush.msra.mxu1 %v1570_v59 }
  0x13   :  { %308 = vmatpush.msrb.mxu2 %v1574_v60  ;;  %740 = vmatpush.msrb.mxu0 %v1574_v60 }
  0x14   :  { %1261 = vmatmul.msk.f32.gmra.mxu2 %vm88_vm1, %v1580_v61  ;;  %328 = vmatpush.msrb.mxu3 %v1583_v62 }
  0x15   :  { %1264 = vmatmul.msk.f32.gmra.mxu3 %vm88_vm1, %v1590_v63  ;;  %309 = vmatpush.msrb.mxu2 %v1592_v0 }
  0x16   :  { %329 = vmatpush.msrb.mxu3 %v1596_v1  ;;  %760 = vmatpush.msra.mxu1 %v1583_v62 }
  0x17   :  { %310 = vmatpush.msrb.mxu2 %v1602_v3  ;;  %741 = vmatpush.msrb.mxu0 %v1592_v0 }
  0x18   :  { %761 = vmatpush.msra.mxu1 %v1596_v1 }
  0x19   :  { %1266 = vmatmul.msk.f32.vlgmr.msrb.gmra.mxu1 %vm88_vm1, %v69_v4  ;;  %v1607_v4 = vld [vmem:[#allocation4 + $0x28] sm:$0xff]  ;;  %311 = vmatpush.msrb.mxu2 %v1610_v6 }
  0x1a   :  { %330 = vmatpush.msrb.mxu3 %v1607_v4  ;;  %742 = vmatpush.msrb.mxu0 %v1602_v3 }
  0x1b   :  { %762 = vmatpush.msra.mxu1 %v1607_v4 }
  0x1c   :  { %743 = vmatpush.msrb.mxu0 %v1610_v6  ;;  %1262 = vmatmul.msk.f32.gmra.mxu2 %vm88_vm1, %v1622_v10 }
  0x86   :  { %v1523_v7 = vpop.f32.mrf.mxu1  ;;  %v138_v8 = vpop.f32.mrf.mxu0 }
  0x87   :  { %v139_v11 = vadd.f32 %v138_v8, %v1525_v9  ;;  %v1614_v8 = vld [vmem:[#allocation4 + $0x18] sm:$0xff] }
  0x88   :  { %331 = vmatpush.msrb.mxu3 %v1614_v8  ;;  %763 = vmatpush.msra.mxu1 %v1614_v8 }
  0x89   :  { %v1275_v13 = vmul.f32 -1.442695, %v139_v11  ;;  %v1625_v11 = vld [vmem:[#allocation4 + $0x8] sm:$0xff] }
  0x8a   :  { %332 = vmatpush.msrb.mxu3 %v1625_v11  ;;  %764 = vmatpush.msra.mxu1 %v1625_v11 }
  0x8b   :  { %1337 = vpow2.f32 %v1275_v13 }
  0x8c   :  { %433 = vmatpush.msra.mxu3 %v1555_v55  ;;  %973 = vmatpush.msrb.mxu1 %v1555_v55 }
  0x8e   :  { %v1528_v14 = vpop.f32.mrf.mxu1  ;;  %434 = vmatpush.msra.mxu3 %v1563_v57  ;;  %974 = vmatpush.msrb.mxu1 %v1563_v57 }
  0x90   :  { %435 = vmatpush.msra.mxu3 %v1570_v59  ;;  %975 = vmatpush.msrb.mxu1 %v1570_v59 }
  0x91   :  { %v1338_v20 = vpop.eup %1337 }
  0x92   :  { %v237_v23 = vadd.f32 1.0, %v1338_v20  ;;  %436 = vmatpush.msra.mxu3 %v1583_v62  ;;  %976 = vmatpush.msrb.mxu1 %v1583_v62 }
  0x94   :  { %vm244_vm3 = vweird.f32 %v237_v23  ;;  %v250_v37 = vand.u32 2147483648, %v237_v23  ;;  %v248_v39 = vand.u32 2147483647, %v237_v23  ;;  %437 = vmatpush.msra.mxu3 %v1596_v1  ;;  %977 = vmatpush.msrb.mxu1 %v1596_v1 }
  0x96   :  { %v182_v19 = vpop.f32.mrf.mxu1  ;;  %v251_v43 = vor.u32 1.1754944e-38, %v250_v37  ;;  %vm249_vm10 = vcmp.eq.f32.partialorder %v248_v39, 8.507059e+37  ;;  %438 = vmatpush.msra.mxu3 %v1607_v4  ;;  %978 = vmatpush.msrb.mxu1 %v1607_v4 }
  0x97   :  { %v183_v21 = vadd.f32 %v182_v19, %v1530_v16 }
  0x98   :  { %439 = vmatpush.msra.mxu3 %v1614_v8  ;;  %979 = vmatpush.msrb.mxu1 %v1614_v8 }
  0x99   :  { %v230_v22 = vmul.f32 %v183_v21, %v1532_v18 }
  0x9a   :  { %440 = vmatpush.msra.mxu3 %v1625_v11  ;;  %980 = vmatpush.msrb.mxu1 %v1625_v11 }
  0x9b   :  { %v1276_v24 = vmul.f32 -1.442695, %v230_v22  ;;  %v1660_v22 = vld [vmem:[#allocation4] sm:$0xff] }
  0x9c   :  { %312 = vmatpush.msrb.mxu2 %v1660_v22  ;;  %744 = vmatpush.msrb.mxu0 %v1660_v22 }
  0x9d   :  { %1339 = vpow2.f32 %v1276_v24 }
  0x9e   :  { %1341 = vrcp.f32 %v237_v23  ;;  %413 = vmatpush.msra.mxu2 %v1546_v53  ;;  %953 = vmatpush.msra.mxu0 %v1546_v53 }
  0xa0   :  { %414 = vmatpush.msra.mxu2 %v1557_v56  ;;  %954 = vmatpush.msra.mxu0 %v1557_v56 }
  0xa2   :  { %415 = vmatpush.msra.mxu2 %v1566_v58  ;;  %955 = vmatpush.msra.mxu0 %v1566_v58 }
  0xa3   :  { %v1340_v25 = vpop.eup %1339 }
  0xa4   :  { %v1342_v26 = vpop.eup %1341  ;;  %v238_v27 = vadd.f32 1.0, %v1340_v25  ;;  %416 = vmatpush.msra.mxu2 %v1574_v60  ;;  %956 = vmatpush.msra.mxu0 %v1574_v60  ;;  %v1721_v25 = vpop.f32.mrf.mxu3 }
  0xa5   :  { %v240_v28 = vmul.f32 %v1342_v26, %v237_v23  ;;  %vm245_vm4 = vweird.f32 %v1342_v26  ;;  %v70_v23 = vld [vmem:[%s1971_s0 + $0x8] sm:$0xff]  ;;  %s1459_s0 = smov 32  }
  0xa6   :  { %1343 = vrcp.f32 %v238_v27  ;;  %v265_v34 = vand.u32 2147483648, %v238_v27  ;;  %v263_v36 = vand.u32 2147483647, %v238_v27  ;;  %vm246_vm6 = vmor %vm244_vm3, %vm245_vm4  ;;  %vm259_vm7 = vweird.f32 %v238_v27  ;;  %1257 = vmatmul.msk.f32.gmra.mxu0 %vm88_vm1, %v70_v23  ;;  %1267 = vmatmul.msk.f32.gmra.mxu1 %vm88_vm1, %v70_v23 }
  0xa7   :  { %v241_v29 = vsub.f32 1.0, %v240_v28  ;;  %417 = vmatpush.msra.mxu2 %v1592_v0  ;;  %957 = vmatpush.msra.mxu0 %v1592_v0 }
  0xa8   :  { %v266_v41 = vor.u32 1.1754944e-38, %v265_v34  ;;  %vm264_vm9 = vcmp.eq.f32.partialorder %v263_v36, 8.507059e+37 }
  0xa9   :  { %v242_v32 = vmul.f32 %v1342_v26, %v241_v29  ;;  %418 = vmatpush.msra.mxu2 %v1602_v3  ;;  %958 = vmatpush.msra.mxu0 %v1602_v3 }
  0xab   :  { %v243_v38 = vadd.f32 %v1342_v26, %v242_v32  ;;  %419 = vmatpush.msra.mxu2 %v1610_v6  ;;  %959 = vmatpush.msra.mxu0 %v1610_v6 }
  0xac   :  { %v1344_v30 = vpop.eup %1343 }
  0xad   :  { %v255_v31 = vmul.f32 %v1344_v30, %v238_v27  ;;  %vm260_vm5 = vweird.f32 %v1344_v30  ;;  %v247_v45 = vsel %vm246_vm6, %v1342_v26, %v243_v38  ;;  %420 = vmatpush.msra.mxu2 %v1660_v22  ;;  %960 = vmatpush.msra.mxu0 %v1660_v22  ;;  %v1725_v27 = vpop.f32.mrf.mxu3 }
  0xae   :  { %vm261_vm8 = vmor %vm259_vm7, %vm260_vm5  ;;  %v252_v48 = vsel %vm249_vm10, %v251_v43, %v247_v45  ;;  %1268 = vmatmul.msk.f32.gmra.mxu1 %vm88_vm1, %v1504_v2 }
  0xaf   :  { %v256_v33 = vsub.f32 1.0, %v255_v31  ;;  %v271_v12 = vmul.f32 0.0, %v252_v48 }
  0xb1   :  { %v257_v35 = vmul.f32 %v1344_v30, %v256_v33 }
  0xb3   :  { %v258_v40 = vadd.f32 %v1344_v30, %v257_v35 }
  0xb5   :  { %v262_v42 = vsel %vm261_vm8, %v1344_v30, %v258_v40 }
  0xb6   :  { %v1536_v44 = vsel %vm264_vm9, %v266_v41, %v262_v42  ;;  %1269 = vmatmul.msk.f32.gmra.mxu1 %vm88_vm1, %v1515_v5  ;;  %v1717_v5 = vpop.f32.mrf.mxu2 }
  0xb7   :  { %v269_v46 = vmul.f32 2.0, %v1536_v44 }
  0xb9   :  { %v1277_v47 = vadd.f32 -1.0, %v269_v46 }
  0xbb   :  { %v272_v49 = vmul.f32 %v1277_v47, %v252_v48 }
  0xbd   :  { %274 = vrot.lane.b32.xlu0 %v272_v49, %s1457_s2 }
  0xbe   :  { %1270 = vmatmul.msk.f32.gmra.mxu1 %vm88_vm1, %v1544_v52  ;;  %v1719_v24 = vpop.f32.mrf.mxu2 }
  0xc5   :  { %281 = vrot.lane.b32.xlu0 %v1254_v51, %s1457_s2 }
  0xc6   :  { %1271 = vmatmul.msk.f32.gmra.mxu1 %vm88_vm1, %v1580_v61  ;;  %v1723_v26 = vpop.f32.mrf.mxu2 }
  0xce   :  { %1272 = vmatmul.msk.f32.gmra.mxu1 %vm88_vm1, %v1622_v10 }
  0xd6   :  { %1273 = vmatmul.msk.f32.gmra.mxu1 %vm88_vm1, %v1553_v54 }
  0xde   :  { %1274 = vmatmul.msk.f32.gmra.mxu1 %vm88_vm1, %v1590_v63 }
 0x123   :  { %v141_v28 = vpop.f32.mrf.mxu0  ;;  %v185_v29 = vpop.f32.mrf.mxu1 }
 0x124   :  { %v142_v30 = vadd.f32 %v141_v28, %v1525_v9  ;;  %v186_v31 = vadd.f32 %v185_v29, %v1530_v16 }
 0x12f   :  { %v275_v13 = vpop.permute.xlu0 %274 }
 0x130   :  { %v1636_v15 = vadd.f32 %v275_v13, %v271_v12 }
 0x132   :  { %1345 = vtanh.f32 %v1636_v15 }
 0x137   :  { %v1650_v20 = vpop.permute.xlu0 %281 }
 0x138   :  { %v1346_v17 = vpop.eup %1345  ;;  %v285_v10 = vmul.f32 %v1650_v20, %v1636_v15 }
 0x139   :  { %v279_v19 = vmul.f32 %v1346_v17, %v1536_v44 }
 0x13b   :  { %v284_v21 = vmul.f32 %v1650_v20, %v279_v19 }
 0x13d   :  { %292 = vrot.lane.b32.xlu1 %v284_v21, %s1457_s2 }
 0x1af   :  { %v293_v2 = vpop.permute.xlu1 %292 }
 0x1b0   :  { %1278 = vmatmul.msk.f32.vlgmr.msrb.gmra.mxu2 %vm294_vm12, %v293_v2  ;;  %1279 = vmatmul.msk.f32.vlgmr.msrb.gmra.mxu3 %vm294_vm12, %v293_v2 }
 0x1b1   :  { %521 = vmatpush.msrb.mxu2 %v1546_v53  ;;  %541 = vmatpush.msrb.mxu3 %v1555_v55 }
 0x1b3   :  { %522 = vmatpush.msrb.mxu2 %v1557_v56  ;;  %542 = vmatpush.msrb.mxu3 %v1563_v57 }
 0x1b5   :  { %523 = vmatpush.msrb.mxu2 %v1566_v58  ;;  %543 = vmatpush.msrb.mxu3 %v1570_v59 }
 0x1b7   :  { %524 = vmatpush.msrb.mxu2 %v1574_v60  ;;  %544 = vmatpush.msrb.mxu3 %v1583_v62 }
 0x1b9   :  { %525 = vmatpush.msrb.mxu2 %v1592_v0  ;;  %545 = vmatpush.msrb.mxu3 %v1596_v1 }
 0x1bb   :  { %526 = vmatpush.msrb.mxu2 %v1602_v3  ;;  %546 = vmatpush.msrb.mxu3 %v1607_v4 }
 0x1bd   :  { %527 = vmatpush.msrb.mxu2 %v1610_v6  ;;  %547 = vmatpush.msrb.mxu3 %v1614_v8 }
 0x1bf   :  { %528 = vmatpush.msrb.mxu2 %v1660_v22  ;;  %548 = vmatpush.msrb.mxu3 %v1625_v11 }
 0x233   :  { %v314_v32 = vpop.f32.mrf.mxu2  ;;  %v334_v33 = vpop.f32.mrf.mxu3 }
 0x234   :  { %v337_v34 = vadd.f32 %v314_v32, %v142_v30  ;;  %v338_v35 = vadd.f32 %v334_v33, %v186_v31 }
 0x236   :  { %v1280_v36 = vmul.f32 -1.442695, %v337_v34  ;;  %v340_v37 = vmul.f32 %v338_v35, %v1532_v18  ;;  %v188_v35 = vpop.f32.mrf.mxu1 }
 0x238   :  { %1347 = vpow2.f32 %v1280_v36  ;;  %v1281_v38 = vmul.f32 -1.442695, %v340_v37  ;;  %v189_v36 = vadd.f32 %v188_v35, %v1530_v16  ;;  %v145_v37 = vadd.f32 %v1523_v7, %v1525_v9 }
 0x23a   :  { %1349 = vpow2.f32 %v1281_v38 }
 0x23e   :  { %v1348_v39 = vpop.eup %1347 }
 0x23f   :  { %v347_v40 = vadd.f32 1.0, %v1348_v39 }
 0x240   :  { %v1350_v41 = vpop.eup %1349 }
 0x241   :  { %1351 = vrcp.f32 %v347_v40  ;;  %v348_v42 = vadd.f32 1.0, %v1350_v41  ;;  %v360_v48 = vand.u32 2147483648, %v347_v40  ;;  %v358_v50 = vand.u32 2147483647, %v347_v40 }
 0x242   :  { %vm354_vm14 = vweird.f32 %v347_v40 }
 0x243   :  { %1353 = vrcp.f32 %v348_v42  ;;  %v375_v52 = vand.u32 2147483648, %v348_v42  ;;  %v373_v63 = vand.u32 2147483647, %v348_v42  ;;  %v361_v12 = vor.u32 1.1754944e-38, %v360_v48 }
 0x244   :  { %vm359_vm1 = vcmp.eq.f32.partialorder %v358_v50, 8.507059e+37  ;;  %vm369_vm2 = vweird.f32 %v348_v42 }
 0x245   :  { %v376_v21 = vor.u32 1.1754944e-38, %v375_v52  ;;  %vm374_vm4 = vcmp.eq.f32.partialorder %v373_v63, 8.507059e+37 }
 0x247   :  { %v1352_v43 = vpop.eup %1351 }
 0x248   :  { %v350_v44 = vmul.f32 %v1352_v43, %v347_v40  ;;  %vm355_vm13 = vweird.f32 %v1352_v43 }
 0x249   :  { %v1354_v45 = vpop.eup %1353  ;;  %vm356_vm0 = vmor %vm354_vm14, %vm355_vm13 }
 0x24a   :  { %v365_v46 = vmul.f32 %v1354_v45, %v348_v42  ;;  %v351_v47 = vsub.f32 1.0, %v350_v44  ;;  %vm370_vm15 = vweird.f32 %v1354_v45 }
 0x24b   :  { %vm371_vm3 = vmor %vm369_vm2, %vm370_vm15 }
 0x24c   :  { %v352_v49 = vmul.f32 %v1352_v43, %v351_v47  ;;  %v366_v51 = vsub.f32 1.0, %v365_v46 }
 0x24e   :  { %v353_v54 = vadd.f32 %v1352_v43, %v352_v49  ;;  %v367_v61 = vmul.f32 %v1354_v45, %v366_v51 }
 0x250   :  { %v357_v13 = vsel %vm356_vm0, %v1352_v43, %v353_v54  ;;  %v368_v17 = vadd.f32 %v1354_v45, %v367_v61 }
 0x251   :  { %v362_v19 = vsel %vm359_vm1, %v361_v12, %v357_v13 }
 0x252   :  { %v372_v23 = vsel %vm371_vm3, %v1354_v45, %v368_v17  ;;  %v381_v2 = vmul.f32 %v362_v19, %v285_v10 }
 0x253   :  { %v377_v28 = vsel %vm374_vm4, %v376_v21, %v372_v23 }
 0x254   :  { %v379_v29 = vmul.f32 2.0, %v377_v28 }
 0x256   :  { %v1282_v30 = vadd.f32 -1.0, %v379_v29 }
 0x258   :  { %v382_v31 = vmul.f32 %v1282_v30, %v362_v19 }
 0x25a   :  { %384 = vrot.lane.b32.xlu1 %v382_v31, %s1457_s2 }
 0x2cc   :  { %v385_v32 = vpop.permute.xlu1 %384 }
 0x2cd   :  { %v1733_v15 = vadd.f32 %v385_v32, %v381_v2 }
 0x2cf   :  { %1355 = vtanh.f32 %v1733_v15 }
 0x2d5   :  { %v1356_v20 = vpop.eup %1355 }
 0x2d6   :  { %v1736_v33 = vmul.f32 %v1356_v20, %v377_v28 }
 0x2d8   :  { %401 = vrot.lane.b32.xlu2 %v1736_v33, %s1457_s2 }
 0x332   :  { %v402_v34 = vpop.permute.xlu2 %401 }
 0x333   :  { %1283 = vmatmul.msk.f32.vlgmr.msra.gmra.mxu2 %vm294_vm12, %v402_v34  ;;  %1284 = vmatmul.msk.f32.vlgmr.msra.gmra.mxu3 %vm294_vm12, %v402_v34 }
 0x334   :  { %629 = vmatpush.msra.mxu2 %v1546_v53  ;;  %649 = vmatpush.msra.mxu3 %v1555_v55 }
 0x336   :  { %630 = vmatpush.msra.mxu2 %v1557_v56  ;;  %650 = vmatpush.msra.mxu3 %v1563_v57 }
 0x338   :  { %631 = vmatpush.msra.mxu2 %v1566_v58  ;;  %651 = vmatpush.msra.mxu3 %v1570_v59 }
 0x33a   :  { %632 = vmatpush.msra.mxu2 %v1574_v60  ;;  %652 = vmatpush.msra.mxu3 %v1583_v62 }
 0x33c   :  { %633 = vmatpush.msra.mxu2 %v1592_v0  ;;  %653 = vmatpush.msra.mxu3 %v1596_v1 }
 0x33e   :  { %634 = vmatpush.msra.mxu2 %v1602_v3  ;;  %654 = vmatpush.msra.mxu3 %v1607_v4 }
 0x340   :  { %635 = vmatpush.msra.mxu2 %v1610_v6  ;;  %655 = vmatpush.msra.mxu3 %v1614_v8 }
 0x342   :  { %636 = vmatpush.msra.mxu2 %v1660_v22  ;;  %656 = vmatpush.msra.mxu3 %v1625_v11 }
 0x3b6   :  { %v422_v38 = vpop.f32.mrf.mxu2  ;;  %v442_v39 = vpop.f32.mrf.mxu3 }
 0x3b7   :  { %v445_v40 = vadd.f32 %v422_v38, %v145_v37  ;;  %v446_v41 = vadd.f32 %v442_v39, %v189_v36 }
 0x3b9   :  { %v1285_v42 = vmul.f32 -1.442695, %v445_v40  ;;  %v448_v43 = vmul.f32 %v446_v41, %v1532_v18 }
 0x3bb   :  { %1357 = vpow2.f32 %v1285_v42  ;;  %v1286_v44 = vmul.f32 -1.442695, %v448_v43  ;;  %v148_v42 = vadd.f32 %v1528_v14, %v1525_v9 }
 0x3bd   :  { %1359 = vpow2.f32 %v1286_v44 }
 0x3c1   :  { %v1358_v45 = vpop.eup %1357 }
 0x3c2   :  { %v455_v46 = vadd.f32 1.0, %v1358_v45 }
 0x3c3   :  { %v1360_v47 = vpop.eup %1359 }
 0x3c4   :  { %1361 = vrcp.f32 %v455_v46  ;;  %v456_v48 = vadd.f32 1.0, %v1360_v47  ;;  %v468_v19 = vand.u32 2147483648, %v455_v46  ;;  %vm462_vm9 = vweird.f32 %v455_v46 }
 0x3c5   :  { %v466_v23 = vand.u32 2147483647, %v455_v46 }
 0x3c6   :  { %1363 = vrcp.f32 %v456_v48  ;;  %v483_v63 = vand.u32 2147483648, %v456_v48  ;;  %v481_v12 = vand.u32 2147483647, %v456_v48  ;;  %vm477_vm7 = vweird.f32 %v456_v48 }
 0x3c7   :  { %v469_v31 = vor.u32 1.1754944e-38, %v468_v19  ;;  %vm467_vm13 = vcmp.eq.f32.partialorder %v466_v23, 8.507059e+37 }
 0x3c8   :  { %v484_v21 = vor.u32 1.1754944e-38, %v483_v63  ;;  %vm482_vm10 = vcmp.eq.f32.partialorder %v481_v12, 8.507059e+37 }
 0x3ca   :  { %v1362_v49 = vpop.eup %1361 }
 0x3cb   :  { %v458_v50 = vmul.f32 %v1362_v49, %v455_v46  ;;  %vm463_vm6 = vweird.f32 %v1362_v49 }
 0x3cc   :  { %v1364_v51 = vpop.eup %1363  ;;  %vm464_vm11 = vmor %vm462_vm9, %vm463_vm6 }
 0x3cd   :  { %v473_v7 = vmul.f32 %v1364_v51, %v456_v48  ;;  %v459_v52 = vsub.f32 1.0, %v458_v50  ;;  %vm478_vm5 = vweird.f32 %v1364_v51 }
 0x3ce   :  { %vm479_vm8 = vmor %vm477_vm7, %vm478_vm5 }
 0x3cf   :  { %v460_v54 = vmul.f32 %v1362_v49, %v459_v52  ;;  %v474_v61 = vsub.f32 1.0, %v473_v7 }
 0x3d1   :  { %v475_v10 = vmul.f32 %v1364_v51, %v474_v61  ;;  %v461_v13 = vadd.f32 %v1362_v49, %v460_v54 }
 0x3d3   :  { %v476_v17 = vadd.f32 %v1364_v51, %v475_v10  ;;  %v465_v29 = vsel %vm464_vm11, %v1362_v49, %v461_v13 }
 0x3d4   :  { %v470_v20 = vsel %vm467_vm13, %v469_v31, %v465_v29 }
 0x3d5   :  { %v480_v2 = vsel %vm479_vm8, %v1364_v51, %v476_v17  ;;  %v489_v35 = vmul.f32 %v470_v20, %v1733_v15  ;;  %v191_v15 = vpop.f32.mrf.mxu1 }
 0x3d6   :  { %v485_v28 = vsel %vm482_vm10, %v484_v21, %v480_v2  ;;  %v192_v41 = vadd.f32 %v191_v15, %v1530_v16 }
 0x3d7   :  { %v487_v30 = vmul.f32 2.0, %v485_v28 }
 0x3d9   :  { %v1287_v32 = vadd.f32 -1.0, %v487_v30 }
 0x3db   :  { %v490_v34 = vmul.f32 %v1287_v32, %v470_v20 }
 0x3dd   :  { %492 = vrot.lane.b32.xlu2 %v490_v34, %s1457_s2 }
 0x437   :  { %v493_v36 = vpop.permute.xlu2 %492 }
 0x438   :  { %v1764_v37 = vadd.f32 %v493_v36, %v489_v35 }
 0x43a   :  { %1365 = vtanh.f32 %v1764_v37 }
 0x440   :  { %v1366_v38 = vpop.eup %1365 }
 0x441   :  { %v1767_v39 = vmul.f32 %v1366_v38, %v485_v28 }
 0x443   :  { %509 = vrot.lane.b32.xlu0 %v1767_v39, %s1457_s2 }
 0x4b5   :  { %v510_v40 = vpop.permute.xlu0 %509 }
 0x4b6   :  { %1288 = vmatmul.msk.f32.vlgmr.msrb.gmra.mxu2 %vm294_vm12, %v510_v40  ;;  %1289 = vmatmul.msk.f32.vlgmr.msrb.gmra.mxu3 %vm294_vm12, %v510_v40 }
 0x4b7   :  { %845 = vmatpush.msrb.mxu2 %v1546_v53  ;;  %865 = vmatpush.msrb.mxu3 %v1555_v55 }
 0x4b9   :  { %846 = vmatpush.msrb.mxu2 %v1557_v56  ;;  %866 = vmatpush.msrb.mxu3 %v1563_v57 }
 0x4bb   :  { %847 = vmatpush.msrb.mxu2 %v1566_v58  ;;  %867 = vmatpush.msrb.mxu3 %v1570_v59 }
 0x4bd   :  { %848 = vmatpush.msrb.mxu2 %v1574_v60  ;;  %868 = vmatpush.msrb.mxu3 %v1583_v62 }
 0x4bf   :  { %849 = vmatpush.msrb.mxu2 %v1592_v0  ;;  %869 = vmatpush.msrb.mxu3 %v1596_v1 }
 0x4c1   :  { %850 = vmatpush.msrb.mxu2 %v1602_v3  ;;  %870 = vmatpush.msrb.mxu3 %v1607_v4 }
 0x4c3   :  { %851 = vmatpush.msrb.mxu2 %v1610_v6  ;;  %871 = vmatpush.msrb.mxu3 %v1614_v8 }
 0x4c5   :  { %852 = vmatpush.msrb.mxu2 %v1660_v22  ;;  %872 = vmatpush.msrb.mxu3 %v1625_v11 }
 0x539   :  { %v530_v43 = vpop.f32.mrf.mxu2  ;;  %v550_v44 = vpop.f32.mrf.mxu3 }
 0x53a   :  { %v553_v45 = vadd.f32 %v530_v43, %v148_v42  ;;  %v554_v46 = vadd.f32 %v550_v44, %v192_v41 }
 0x53c   :  { %v1290_v47 = vmul.f32 -1.442695, %v553_v45  ;;  %v556_v48 = vmul.f32 %v554_v46, %v1532_v18 }
 0x53e   :  { %1367 = vpow2.f32 %v1290_v47  ;;  %v1291_v49 = vmul.f32 -1.442695, %v556_v48 }
 0x540   :  { %1369 = vpow2.f32 %v1291_v49 }
 0x544   :  { %v1368_v50 = vpop.eup %1367 }
 0x545   :  { %v563_v51 = vadd.f32 1.0, %v1368_v50 }
 0x546   :  { %v1370_v7 = vpop.eup %1369 }
 0x547   :  { %1371 = vrcp.f32 %v563_v51  ;;  %v564_v52 = vadd.f32 1.0, %v1370_v7  ;;  %v576_v28 = vand.u32 2147483648, %v563_v51  ;;  %vm570_vm2 = vweird.f32 %v563_v51 }
 0x548   :  { %v574_v30 = vand.u32 2147483647, %v563_v51 }
 0x549   :  { %1373 = vrcp.f32 %v564_v52  ;;  %v591_v17 = vand.u32 2147483648, %v564_v52  ;;  %v589_v21 = vand.u32 2147483647, %v564_v52  ;;  %vm585_vm0 = vweird.f32 %v564_v52 }
 0x54a   :  { %v577_v35 = vor.u32 1.1754944e-38, %v576_v28  ;;  %vm575_vm5 = vcmp.eq.f32.partialorder %v574_v30, 8.507059e+37 }
 0x54b   :  { %v592_v29 = vor.u32 1.1754944e-38, %v591_v17  ;;  %vm590_vm3 = vcmp.eq.f32.partialorder %v589_v21, 8.507059e+37 }
 0x54d   :  { %v1372_v54 = vpop.eup %1371 }
 0x54e   :  { %v566_v61 = vmul.f32 %v1372_v54, %v563_v51  ;;  %vm571_vm15 = vweird.f32 %v1372_v54 }
 0x54f   :  { %v1374_v63 = vpop.eup %1373  ;;  %vm572_vm4 = vmor %vm570_vm2, %vm571_vm15 }
 0x550   :  { %v581_v14 = vmul.f32 %v1374_v63, %v564_v52  ;;  %v567_v10 = vsub.f32 1.0, %v566_v61  ;;  %vm586_vm14 = vweird.f32 %v1374_v63 }
 0x551   :  { %vm587_vm1 = vmor %vm585_vm0, %vm586_vm14 }
 0x552   :  { %v568_v12 = vmul.f32 %v1372_v54, %v567_v10  ;;  %v582_v13 = vsub.f32 1.0, %v581_v14 }
 0x554   :  { %v583_v19 = vmul.f32 %v1374_v63, %v582_v13  ;;  %v569_v23 = vadd.f32 %v1372_v54, %v568_v12 }
 0x556   :  { %v584_v2 = vadd.f32 %v1374_v63, %v583_v19  ;;  %v573_v20 = vsel %vm572_vm4, %v1372_v54, %v569_v23 }
 0x557   :  { %v578_v38 = vsel %vm575_vm5, %v577_v35, %v573_v20 }
 0x558   :  { %v588_v31 = vsel %vm587_vm1, %v1374_v63, %v584_v2  ;;  %v597_v15 = vmul.f32 %v578_v38, %v1764_v37 }
 0x559   :  { %v593_v32 = vsel %vm590_vm3, %v592_v29, %v588_v31 }
 0x55a   :  { %v595_v34 = vmul.f32 2.0, %v593_v32 }
 0x55c   :  { %v1292_v36 = vadd.f32 -1.0, %v595_v34 }
 0x55e   :  { %v598_v40 = vmul.f32 %v1292_v36, %v578_v38  ;;  %v154_v38 = vadd.f32 %v1719_v24, %v1525_v9 }
 0x560   :  { %600 = vrot.lane.b32.xlu1 %v598_v40, %s1457_s2 }
 0x5d2   :  { %v601_v41 = vpop.permute.xlu1 %600 }
 0x5d3   :  { %v1795_v42 = vadd.f32 %v601_v41, %v597_v15 }
 0x5d5   :  { %1375 = vtanh.f32 %v1795_v42 }
 0x5db   :  { %v1376_v43 = vpop.eup %1375 }
 0x5dc   :  { %v1798_v44 = vmul.f32 %v1376_v43, %v593_v32 }
 0x5de   :  { %617 = vrot.lane.b32.xlu2 %v1798_v44, %s1457_s2 }
 0x638   :  { %v618_v45 = vpop.permute.xlu2 %617 }
 0x639   :  { %1293 = vmatmul.msk.f32.vlgmr.msra.gmra.mxu2 %vm294_vm12, %v618_v45  ;;  %1294 = vmatmul.msk.f32.vlgmr.msra.gmra.mxu3 %vm294_vm12, %v618_v45 }
 0x63a   :  { %1061 = vmatpush.msra.mxu2 %v1546_v53  ;;  %1081 = vmatpush.msra.mxu3 %v1555_v55  ;;  %v194_v53 = vpop.f32.mrf.mxu1 }
 0x63b   :  { %v195_v55 = vadd.f32 %v194_v53, %v1530_v16 }
 0x63c   :  { %1062 = vmatpush.msra.mxu2 %v1557_v56  ;;  %1082 = vmatpush.msra.mxu3 %v1563_v57  ;;  %v151_v56 = vadd.f32 %v1717_v5, %v1525_v9 }
 0x63e   :  { %1063 = vmatpush.msra.mxu2 %v1566_v58  ;;  %1083 = vmatpush.msra.mxu3 %v1570_v59 }
 0x640   :  { %1064 = vmatpush.msra.mxu2 %v1574_v60  ;;  %1084 = vmatpush.msra.mxu3 %v1583_v62 }
 0x642   :  { %1065 = vmatpush.msra.mxu2 %v1592_v0  ;;  %1085 = vmatpush.msra.mxu3 %v1596_v1  ;;  %v197_v20 = vpop.f32.mrf.mxu1 }
 0x643   :  { %v198_v40 = vadd.f32 %v197_v20, %v1530_v16 }
 0x644   :  { %1066 = vmatpush.msra.mxu2 %v1602_v3  ;;  %1086 = vmatpush.msra.mxu3 %v1607_v4 }
 0x646   :  { %1067 = vmatpush.msra.mxu2 %v1610_v6  ;;  %1087 = vmatpush.msra.mxu3 %v1614_v8 }
 0x648   :  { %1068 = vmatpush.msra.mxu2 %v1660_v22  ;;  %1088 = vmatpush.msra.mxu3 %v1625_v11 }
 0x64a   :  { %v1832_v34 = vpop.f32.mrf.mxu1 }
 0x652   :  { %v1834_v35 = vpop.f32.mrf.mxu1 }
 0x65a   :  { %v1836_v36 = vpop.f32.mrf.mxu1 }
 0x6bc   :  { %v638_v57 = vpop.f32.mrf.mxu2  ;;  %v658_v58 = vpop.f32.mrf.mxu3 }
 0x6bd   :  { %v661_v59 = vadd.f32 %v638_v57, %v151_v56  ;;  %v662_v60 = vadd.f32 %v658_v58, %v195_v55 }
 0x6bf   :  { %v1295_v62 = vmul.f32 -1.442695, %v661_v59  ;;  %v664_v0 = vmul.f32 %v662_v60, %v1532_v18 }
 0x6c1   :  { %1377 = vpow2.f32 %v1295_v62  ;;  %v1296_v1 = vmul.f32 -1.442695, %v664_v0 }
 0x6c3   :  { %1379 = vpow2.f32 %v1296_v1 }
 0x6c7   :  { %v1378_v3 = vpop.eup %1377 }
 0x6c8   :  { %v671_v4 = vadd.f32 1.0, %v1378_v3 }
 0x6c9   :  { %v1380_v6 = vpop.eup %1379 }
 0x6ca   :  { %1381 = vrcp.f32 %v671_v4  ;;  %v672_v8 = vadd.f32 1.0, %v1380_v6  ;;  %v684_v54 = vand.u32 2147483648, %v671_v4  ;;  %vm678_vm10 = vweird.f32 %v671_v4 }
 0x6cb   :  { %v682_v63 = vand.u32 2147483647, %v671_v4 }
 0x6cc   :  { %1383 = vrcp.f32 %v672_v8  ;;  %v699_v49 = vand.u32 2147483648, %v672_v8  ;;  %v697_v51 = vand.u32 2147483647, %v672_v8  ;;  %vm693_vm8 = vweird.f32 %v672_v8 }
 0x6cd   :  { %v685_v17 = vor.u32 1.1754944e-38, %v684_v54  ;;  %vm683_vm14 = vcmp.eq.f32.partialorder %v682_v63, 8.507059e+37 }
 0x6ce   :  { %v700_v61 = vor.u32 1.1754944e-38, %v699_v49  ;;  %vm698_vm11 = vcmp.eq.f32.partialorder %v697_v51, 8.507059e+37 }
 0x6d0   :  { %v1382_v11 = vpop.eup %1381 }
 0x6d1   :  { %v674_v22 = vmul.f32 %v1382_v11, %v671_v4  ;;  %vm679_vm7 = vweird.f32 %v1382_v11 }
 0x6d2   :  { %v1384_v37 = vpop.eup %1383  ;;  %vm680_vm13 = vmor %vm678_vm10, %vm679_vm7 }
 0x6d3   :  { %v689_v5 = vmul.f32 %v1384_v37, %v672_v8  ;;  %v675_v46 = vsub.f32 1.0, %v674_v22  ;;  %vm694_vm6 = vweird.f32 %v1384_v37 }
 0x6d4   :  { %vm695_vm9 = vmor %vm693_vm8, %vm694_vm6 }
 0x6d5   :  { %v676_v47 = vmul.f32 %v1382_v11, %v675_v46  ;;  %v690_v48 = vsub.f32 1.0, %v689_v5 }
 0x6d7   :  { %v691_v50 = vmul.f32 %v1384_v37, %v690_v48  ;;  %v677_v7 = vadd.f32 %v1382_v11, %v676_v47 }
 0x6d9   :  { %v692_v52 = vadd.f32 %v1384_v37, %v691_v50  ;;  %v681_v12 = vsel %vm680_vm13, %v1382_v11, %v677_v7 }
 0x6da   :  { %v686_v21 = vsel %vm683_vm14, %v685_v17, %v681_v12 }
 0x6db   :  { %v696_v14 = vsel %vm695_vm9, %v1384_v37, %v692_v52  ;;  %v705_v2 = vmul.f32 %v686_v21, %v1795_v42 }
 0x6dc   :  { %v701_v10 = vsel %vm698_vm11, %v700_v61, %v696_v14 }
 0x6dd   :  { %v703_v13 = vmul.f32 2.0, %v701_v10 }
 0x6df   :  { %v1297_v19 = vadd.f32 -1.0, %v703_v13 }
 0x6e1   :  { %v706_v23 = vmul.f32 %v1297_v19, %v686_v21  ;;  %v157_v19 = vadd.f32 %v1723_v26, %v1525_v9  ;;  %v201_v21 = vadd.f32 %v1832_v34, %v1530_v16 }
 0x6e3   :  { %708 = vrot.lane.b32.xlu0 %v706_v23, %s1457_s2 }
 0x755   :  { %v709_v28 = vpop.permute.xlu0 %708 }
 0x756   :  { %v711_v29 = vadd.f32 %v709_v28, %v705_v2 }
 0x758   :  { %1385 = vtanh.f32 %v711_v29 }
 0x75e   :  { %v1386_v30 = vpop.eup %1385 }
 0x75f   :  { %v1826_v31 = vmul.f32 %v1386_v30, %v701_v10 }
 0x761   :  { %725 = vrot.lane.b32.xlu1 %v1826_v31, %s1457_s2 }
 0x7d3   :  { %v726_v32 = vpop.permute.xlu1 %725 }
 0x7d4   :  { %1298 = vmatmul.msk.f32.vlgmr.msrb.gmra.mxu0 %vm294_vm12, %v726_v32  ;;  %1299 = vmatmul.msk.f32.vlgmr.msra.gmra.mxu1 %vm294_vm12, %v726_v32 }
 0x851   :  { %v746_v15 = vpop.f32.mrf.mxu0  ;;  %v766_v41 = vpop.f32.mrf.mxu1 }
 0x852   :  { %v769_v42 = vadd.f32 %v746_v15, %v154_v38  ;;  %v770_v43 = vadd.f32 %v766_v41, %v198_v40 }
 0x854   :  { %v1300_v45 = vmul.f32 -1.442695, %v769_v42  ;;  %v772_v53 = vmul.f32 %v770_v43, %v1532_v18 }
 0x856   :  { %1387 = vpow2.f32 %v1300_v45  ;;  %v1301_v55 = vmul.f32 -1.442695, %v772_v53 }
 0x858   :  { %1389 = vpow2.f32 %v1301_v55 }
 0x85c   :  { %v1388_v56 = vpop.eup %1387 }
 0x85d   :  { %v779_v57 = vadd.f32 1.0, %v1388_v56 }
 0x85e   :  { %v1390_v58 = vpop.eup %1389 }
 0x85f   :  { %1391 = vrcp.f32 %v779_v57  ;;  %v780_v59 = vadd.f32 1.0, %v1390_v58  ;;  %v792_v5 = vand.u32 2147483648, %v779_v57  ;;  %vm786_vm3 = vweird.f32 %v779_v57 }
 0x860   :  { %v790_v47 = vand.u32 2147483647, %v779_v57 }
 0x861   :  { %1393 = vrcp.f32 %v780_v59  ;;  %v807_v6 = vand.u32 2147483648, %v780_v59  ;;  %v805_v11 = vand.u32 2147483647, %v780_v59  ;;  %vm801_vm1 = vweird.f32 %v780_v59 }
 0x862   :  { %v793_v7 = vor.u32 1.1754944e-38, %v792_v5  ;;  %vm791_vm6 = vcmp.eq.f32.partialorder %v790_v47, 8.507059e+37 }
 0x863   :  { %v808_v46 = vor.u32 1.1754944e-38, %v807_v6  ;;  %vm806_vm4 = vcmp.eq.f32.partialorder %v805_v11, 8.507059e+37 }
 0x865   :  { %v1392_v60 = vpop.eup %1391 }
 0x866   :  { %v782_v24 = vmul.f32 %v1392_v60, %v779_v57  ;;  %vm787_vm0 = vweird.f32 %v1392_v60 }
 0x867   :  { %v1394_v62 = vpop.eup %1393  ;;  %vm788_vm5 = vmor %vm786_vm3, %vm787_vm0  ;;  %vm394_vm0 = vcmask 261120  }
 0x868   :  { %v797_v0 = vmul.f32 %v1394_v62, %v780_v59  ;;  %v783_v1 = vsub.f32 1.0, %v782_v24  ;;  %vm802_vm15 = vweird.f32 %v1394_v62 }
 0x869   :  { %vm803_vm2 = vmor %vm801_vm1, %vm802_vm15 }
 0x86a   :  { %v784_v3 = vmul.f32 %v1392_v60, %v783_v1  ;;  %v798_v4 = vsub.f32 1.0, %v797_v0 }
 0x86c   :  { %v799_v8 = vmul.f32 %v1394_v62, %v798_v4  ;;  %v785_v22 = vadd.f32 %v1392_v60, %v784_v3 }
 0x86e   :  { %v800_v37 = vadd.f32 %v1394_v62, %v799_v8  ;;  %v789_v50 = vsel %vm788_vm5, %v1392_v60, %v785_v22 }
 0x86f   :  { %v794_v54 = vsel %vm791_vm6, %v793_v7, %v789_v50  ;;  %v1163_v50 = vld [vmem:[%s1975_s4 + $0x18] sm:$0xff]  ;;  %v1161_v7 = vld [vmem:[%s1975_s4 + $0x8] sm:$0xff] }
 0x870   :  { %v804_v48 = vsel %vm803_vm2, %v1394_v62, %v800_v37  ;;  %v813_v63 = vmul.f32 %v794_v54, %v711_v29  ;;  %1204 = vmatpush.msrb.mxu0 %v1163_v50 }
 0x871   :  { %v809_v49 = vsel %vm806_vm4, %v808_v46, %v804_v48 }
 0x872   :  { %v811_v51 = vmul.f32 2.0, %v809_v49 }
 0x874   :  { %v1302_v52 = vadd.f32 -1.0, %v811_v51  ;;  %v1162_v51 = vld [vmem:[%s1975_s4 + $0x10] sm:$0xff] }
 0x875   :  { %1205 = vmatpush.msrb.mxu0 %v1162_v51 }
 0x876   :  { %v814_v61 = vmul.f32 %v1302_v52, %v794_v54 }
 0x877   :  { %1206 = vmatpush.msrb.mxu0 %v1161_v7 }
 0x878   :  { %816 = vrot.lane.b32.xlu2 %v814_v61, %s1457_s2 }
 0x8d2   :  { %v817_v14 = vpop.permute.xlu2 %816 }
 0x8d3   :  { %v819_v10 = vadd.f32 %v817_v14, %v813_v63  ;;  %v160_v14 = vadd.f32 %v1721_v25, %v1525_v9  ;;  %v1890_v25 = vld [vmem:[%s1976_s5] ss:$0 sm:$0xff] }
 0x8d5   :  { %1395 = vtanh.f32 %v819_v10 }
 0x8db   :  { %v1396_v12 = vpop.eup %1395 }
 0x8dc   :  { %v1843_v13 = vmul.f32 %v1396_v12, %v809_v49 }
 0x8de   :  { %833 = vrot.lane.b32.xlu0 %v1843_v13, %s1457_s2 }
 0x950   :  { %v834_v17 = vpop.permute.xlu0 %833 }
 0x951   :  { %1303 = vmatmul.msk.f32.vlgmr.msrb.gmra.mxu2 %vm294_vm12, %v834_v17  ;;  %1304 = vmatmul.msk.f32.vlgmr.msrb.gmra.mxu3 %vm294_vm12, %v834_v17 }
 0x9d4   :  { %v854_v23 = vpop.f32.mrf.mxu2  ;;  %v874_v2 = vpop.f32.mrf.mxu3 }
 0x9d5   :  { %v877_v28 = vadd.f32 %v854_v23, %v157_v19  ;;  %v878_v29 = vadd.f32 %v874_v2, %v201_v21 }
 0x9d7   :  { %v1305_v30 = vmul.f32 -1.442695, %v877_v28  ;;  %v880_v32 = vmul.f32 %v878_v29, %v1532_v18 }
 0x9d9   :  { %1397 = vpow2.f32 %v1305_v30  ;;  %v1306_v20 = vmul.f32 -1.442695, %v880_v32 }
 0x9db   :  { %1399 = vpow2.f32 %v1306_v20 }
 0x9df   :  { %v1398_v38 = vpop.eup %1397 }
 0x9e0   :  { %v887_v40 = vadd.f32 1.0, %v1398_v38 }
 0x9e1   :  { %v1400_v15 = vpop.eup %1399 }
 0x9e2   :  { %1401 = vrcp.f32 %v887_v40  ;;  %v888_v41 = vadd.f32 1.0, %v1400_v15  ;;  %v900_v24 = vand.u32 2147483648, %v887_v40  ;;  %vm894_vm11 = vweird.f32 %v887_v40 }
 0x9e3   :  { %v898_v0 = vand.u32 2147483647, %v887_v40 }
 0x9e4   :  { %1403 = vrcp.f32 %v888_v41  ;;  %v915_v56 = vand.u32 2147483648, %v888_v41  ;;  %v913_v58 = vand.u32 2147483647, %v888_v41  ;;  %vm909_vm9 = vweird.f32 %v888_v41 }
 0x9e5   :  { %v901_v8 = vor.u32 1.1754944e-38, %v900_v24  ;;  %vm899_vm15 = vcmp.eq.f32.partialorder %v898_v0, 8.507059e+37 }
 0x9e6   :  { %v916_v62 = vor.u32 1.1754944e-38, %v915_v56  ;;  %vm914_vm13 = vcmp.eq.f32.partialorder %v913_v58, 8.507059e+37 }
 0x9e8   :  { %v1402_v26 = vpop.eup %1401 }
 0x9e9   :  { %v890_v42 = vmul.f32 %v1402_v26, %v887_v40  ;;  %vm895_vm8 = vweird.f32 %v1402_v26 }
 0x9ea   :  { %v1404_v43 = vpop.eup %1403  ;;  %vm896_vm14 = vmor %vm894_vm11, %vm895_vm8 }
 0x9eb   :  { %v905_v34 = vmul.f32 %v1404_v43, %v888_v41  ;;  %v891_v45 = vsub.f32 1.0, %v890_v42  ;;  %vm910_vm7 = vweird.f32 %v1404_v43 }
 0x9ec   :  { %vm911_vm10 = vmor %vm909_vm9, %vm910_vm7 }
 0x9ed   :  { %v892_v53 = vmul.f32 %v1402_v26, %v891_v45  ;;  %v906_v55 = vsub.f32 1.0, %v905_v34 }
 0x9ef   :  { %v907_v57 = vmul.f32 %v1404_v43, %v906_v55  ;;  %v893_v59 = vadd.f32 %v1402_v26, %v892_v53 }
 0x9f1   :  { %v908_v60 = vadd.f32 %v1404_v43, %v907_v57  ;;  %v897_v4 = vsel %vm896_vm14, %v1402_v26, %v893_v59 }
 0x9f2   :  { %v902_v22 = vsel %vm899_vm15, %v901_v8, %v897_v4 }
 0x9f3   :  { %v912_v1 = vsel %vm911_vm10, %v1404_v43, %v908_v60  ;;  %v921_v5 = vmul.f32 %v902_v22, %v819_v10  ;;  %v204_v10 = vadd.f32 %v1834_v35, %v1530_v16 }
 0x9f4   :  { %v917_v3 = vsel %vm914_vm13, %v916_v62, %v912_v1 }
 0x9f5   :  { %v919_v6 = vmul.f32 2.0, %v917_v3 }
 0x9f7   :  { %v1307_v11 = vadd.f32 -1.0, %v919_v6 }
 0x9f9   :  { %v922_v37 = vmul.f32 %v1307_v11, %v902_v22 }
 0x9fb   :  { %924 = vrot.lane.b32.xlu1 %v922_v37, %s1457_s2 }
 0xa6d   :  { %v925_v46 = vpop.permute.xlu1 %924 }
 0xa6e   :  { %v1855_v47 = vadd.f32 %v925_v46, %v921_v5 }
 0xa70   :  { %1405 = vtanh.f32 %v1855_v47 }
 0xa76   :  { %v1406_v48 = vpop.eup %1405 }
 0xa77   :  { %v929_v49 = vmul.f32 %v1406_v48, %v917_v3 }
 0xa79   :  { %941 = vrot.lane.b32.xlu2 %v929_v49, %s1457_s2 }
 0xa81   :  { %391 = vrot.lane.b32.xlu2 %v1736_v33, %s1459_s0  ;;  %v1160_v33 = vld [vmem:[%s1975_s4] sm:$0xff] }
 0xa82   :  { %1207 = vmatpush.msrb.mxu0 %v1160_v33 }
 0xa89   :  { %607 = vrot.lane.b32.xlu2 %v1798_v44, %s1459_s0 }
 0xa91   :  { %931 = vrot.lane.b32.xlu2 %v929_v49, %s1459_s0 }
 0xad3   :  { %v942_v44 = vpop.permute.xlu2 %941 }
 0xad4   :  { %1308 = vmatmul.msk.f32.vlgmr.msra.gmra.mxu0 %vm294_vm12, %v942_v44  ;;  %1309 = vmatmul.msk.f32.vlgmr.msrb.gmra.mxu1 %vm294_vm12, %v942_v44 }
 0xadb   :  { %v392_v52 = vpop.permute.xlu2 %391 }
 0xadc   :  { %395 = vst.msk [vmem:[#allocation3] sm:$0xff] %vm394_vm0, %v392_v52 }
 0xae3   :  { %v608_v54 = vpop.permute.xlu2 %607  ;;  %v1152_v61 = vld [vmem:[#allocation3] sm:$0xff] }
 0xae4   :  { %611 = vst.msk [vmem:[#allocation3 + $0x10] sm:$0xff] %vm394_vm0, %v608_v54  ;;  %1318 = vmatmul.msk.f32.vlgmr.msrb.gmra.mxu0 %vm394_vm0, %v1152_v61 }
 0xaeb   :  { %v932_v63 = vpop.permute.xlu2 %931  ;;  %v1154_v51 = vld [vmem:[#allocation3 + $0x10] sm:$0xff] }
 0xaec   :  { %935 = vst.msk [vmem:[#allocation3 + $0x28] sm:$0xff] %vm394_vm0, %v932_v63 }
 0xb51   :  { %v962_v12 = vpop.f32.mrf.mxu0  ;;  %v982_v17 = vpop.f32.mrf.mxu1 }
 0xb52   :  { %v985_v19 = vadd.f32 %v962_v12, %v160_v14  ;;  %v986_v21 = vadd.f32 %v982_v17, %v204_v10 }
 0xb54   :  { %v1310_v23 = vmul.f32 -1.442695, %v985_v19  ;;  %v988_v2 = vmul.f32 %v986_v21, %v1532_v18 }
 0xb56   :  { %1407 = vpow2.f32 %v1310_v23  ;;  %v1311_v28 = vmul.f32 -1.442695, %v988_v2 }
 0xb58   :  { %1409 = vpow2.f32 %v1311_v28 }
 0xb5c   :  { %v1408_v29 = vpop.eup %1407 }
 0xb5d   :  { %v995_v30 = vadd.f32 1.0, %v1408_v29 }
 0xb5e   :  { %v1410_v32 = vpop.eup %1409 }
 0xb5f   :  { %1411 = vrcp.f32 %v995_v30  ;;  %v996_v35 = vadd.f32 1.0, %v1410_v32  ;;  %v1008_v58 = vand.u32 2147483648, %v995_v30  ;;  %vm1002_vm5 = vweird.f32 %v995_v30 }
 0xb60   :  { %v1006_v60 = vand.u32 2147483647, %v995_v30 }
 0xb61   :  { %1413 = vrcp.f32 %v996_v35  ;;  %v1209_v20 = vpop.f32.mrf.mxu0  ;;  %v1023_v45 = vand.u32 2147483648, %v996_v35  ;;  %v1021_v55 = vand.u32 2147483647, %v996_v35  ;;  %vm1017_vm3 = vweird.f32 %v996_v35 }
 0xb62   :  { %v1210_v38 = vadd.f32 %v1890_v25, %v1209_v20  ;;  %v1009_v3 = vor.u32 1.1754944e-38, %v1008_v58  ;;  %vm1007_vm8 = vcmp.eq.f32.partialorder %v1006_v60, 8.507059e+37 }
 0xb63   :  { %v1024_v59 = vor.u32 1.1754944e-38, %v1023_v45  ;;  %vm1022_vm6 = vcmp.eq.f32.partialorder %v1021_v55, 8.507059e+37 }
 0xb64   :  { %1233 = vst.msk [vmem:[%s1977_s6] sm:$0xff] %vm394_vm0, %v1210_v38 }
 0xb65   :  { %v1412_v40 = vpop.eup %1411 }
 0xb66   :  { %v998_v15 = vmul.f32 %v1412_v40, %v995_v30  ;;  %vm1003_vm2 = vweird.f32 %v1412_v40 }
 0xb67   :  { %v1414_v41 = vpop.eup %1413  ;;  %vm1004_vm7 = vmor %vm1002_vm5, %vm1003_vm2 }
 0xb68   :  { %v1013_v26 = vmul.f32 %v1414_v41, %v996_v35  ;;  %v999_v42 = vsub.f32 1.0, %v998_v15  ;;  %vm1018_vm1 = vweird.f32 %v1414_v41 }
 0xb69   :  { %vm1019_vm4 = vmor %vm1017_vm3, %vm1018_vm1 }
 0xb6a   :  { %v1000_v43 = vmul.f32 %v1412_v40, %v999_v42  ;;  %v1014_v34 = vsub.f32 1.0, %v1013_v26 }
 0xb6c   :  { %v1015_v53 = vmul.f32 %v1414_v41, %v1014_v34  ;;  %v1001_v56 = vadd.f32 %v1412_v40, %v1000_v43 }
 0xb6e   :  { %v1016_v57 = vadd.f32 %v1414_v41, %v1015_v53  ;;  %v1005_v0 = vsel %vm1004_vm7, %v1412_v40, %v1001_v56 }
 0xb6f   :  { %v1010_v6 = vsel %vm1007_vm8, %v1009_v3, %v1005_v0  ;;  %v1157_v3 = vld [vmem:[#allocation3 + $0x28] sm:$0xff] }
 0xb70   :  { %v1020_v24 = vsel %vm1019_vm4, %v1414_v41, %v1016_v57  ;;  %v1029_v11 = vmul.f32 %v1010_v6, %v1855_v47 }
 0xb71   :  { %v1025_v62 = vsel %vm1022_vm6, %v1024_v59, %v1020_v24 }
 0xb72   :  { %v1027_v1 = vmul.f32 2.0, %v1025_v62 }
 0xb74   :  { %v1312_v4 = vadd.f32 -1.0, %v1027_v1 }
 0xb76   :  { %v1030_v8 = vmul.f32 %v1312_v4, %v1010_v6 }
 0xb78   :  { %1032 = vrot.lane.b32.xlu0 %v1030_v8, %s1457_s2 }
 0xbea   :  { %v1033_v22 = vpop.permute.xlu0 %1032 }
 0xbeb   :  { %v1899_v37 = vadd.f32 %v1033_v22, %v1029_v11 }
 0xbed   :  { %1415 = vtanh.f32 %v1899_v37 }
 0xbf3   :  { %v1416_v5 = vpop.eup %1415 }
 0xbf4   :  { %v1902_v46 = vmul.f32 %v1416_v5, %v1025_v62 }
 0xbf6   :  { %1049 = vrot.lane.b32.xlu1 %v1902_v46, %s1457_s2 }
 0xbfe   :  { %499 = vrot.lane.b32.xlu1 %v1767_v39, %s1459_s0  ;;  %v163_v39 = vadd.f32 %v1725_v27, %v1525_v9 }
 0xc06   :  { %823 = vrot.lane.b32.xlu1 %v1843_v13, %s1459_s0  ;;  %v207_v13 = vadd.f32 %v1836_v36, %v1530_v16 }
 0xc68   :  { %v1050_v48 = vpop.permute.xlu1 %1049 }
 0xc69   :  { %1313 = vmatmul.msk.f32.vlgmr.msra.gmra.mxu2 %vm294_vm12, %v1050_v48  ;;  %1314 = vmatmul.msk.f32.vlgmr.msra.gmra.mxu3 %vm294_vm12, %v1050_v48 }
 0xc70   :  { %v500_v47 = vpop.permute.xlu1 %499 }
 0xc71   :  { %503 = vst.msk [vmem:[#allocation3 + $0x8] sm:$0xff] %vm394_vm0, %v500_v47 }
 0xc78   :  { %v824_v49 = vpop.permute.xlu1 %823  ;;  %v1153_v50 = vld [vmem:[#allocation3 + $0x8] sm:$0xff] }
 0xc79   :  { %827 = vst.msk [vmem:[#allocation3 + $0x20] sm:$0xff] %vm394_vm0, %v824_v49  ;;  %1319 = vmatmul.msk.f32.gmra.mxu0 %vm394_vm0, %v1153_v50 }
 0xc81   :  { %1320 = vmatmul.msk.f32.gmra.mxu0 %vm394_vm0, %v1154_v51 }
 0xcec   :  { %v1070_v7 = vpop.f32.mrf.mxu2  ;;  %v1090_v33 = vpop.f32.mrf.mxu3 }
 0xced   :  { %v1093_v44 = vadd.f32 %v1070_v7, %v163_v39  ;;  %v1094_v52 = vadd.f32 %v1090_v33, %v207_v13 }
 0xcef   :  { %v1315_v54 = vmul.f32 -1.442695, %v1093_v44  ;;  %v1096_v61 = vmul.f32 %v1094_v52, %v1532_v18 }
 0xcf1   :  { %1417 = vpow2.f32 %v1315_v54  ;;  %v1316_v63 = vmul.f32 -1.442695, %v1096_v61 }
 0xcf3   :  { %1419 = vpow2.f32 %v1316_v63 }
 0xcf6   :  { %v1212_v14 = vpop.f32.mrf.mxu0 }
 0xcf7   :  { %v1418_v10 = vpop.eup %1417  ;;  %v1213_v12 = vadd.f32 %v1890_v25, %v1212_v14 }
 0xcf8   :  { %v1103_v17 = vadd.f32 1.0, %v1418_v10 }
 0xcf9   :  { %v1420_v19 = vpop.eup %1419  ;;  %1234 = vst.msk [vmem:[%s1977_s6 + $0x8] sm:$0xff] %vm394_vm0, %v1213_v12 }
 0xcfa   :  { %1421 = vrcp.f32 %v1103_v17  ;;  %v1104_v9 = vadd.f32 1.0, %v1420_v19  ;;  %v1116_v40 = vand.u32 2147483648, %v1103_v17  ;;  %vm1110_vm13 = vweird.f32 %v1103_v17 }
 0xcfb   :  { %v1114_v41 = vand.u32 2147483647, %v1103_v17 }
 0xcfc   :  { %1423 = vrcp.f32 %v1104_v9  ;;  %v1131_v30 = vand.u32 2147483648, %v1104_v9  ;;  %v1129_v35 = vand.u32 2147483647, %v1104_v9  ;;  %vm1125_vm10 = vweird.f32 %v1104_v9 }
 0xcfd   :  { %v1117_v45 = vor.u32 1.1754944e-38, %v1116_v40  ;;  %vm1115_vm1 = vcmp.eq.f32.partialorder %v1114_v41, 8.507059e+37 }
 0xcfe   :  { %v1215_v16 = vpop.f32.mrf.mxu0  ;;  %v1132_v15 = vor.u32 1.1754944e-38, %v1131_v30  ;;  %vm1130_vm14 = vcmp.eq.f32.partialorder %v1129_v35, 8.507059e+37 }
 0xcff   :  { %v1216_v18 = vadd.f32 %v1890_v25, %v1215_v16 }
 0xd00   :  { %v1422_v27 = vpop.eup %1421 }
 0xd01   :  { %v1106_v36 = vmul.f32 %v1422_v27, %v1103_v17  ;;  %1235 = vst.msk [vmem:[%s1977_s6 + $0x10] sm:$0xff] %vm394_vm0, %v1216_v18  ;;  %vm1111_vm9 = vweird.f32 %v1422_v27 }
 0xd02   :  { %v1424_v21 = vpop.eup %1423  ;;  %vm1112_vm15 = vmor %vm1110_vm13, %vm1111_vm9 }
 0xd03   :  { %v1121_v23 = vmul.f32 %v1424_v21, %v1104_v9  ;;  %v1107_v2 = vsub.f32 1.0, %v1106_v36  ;;  %vm1126_vm12 = vweird.f32 %v1424_v21 }
 0xd04   :  { %vm1127_vm11 = vmor %vm1125_vm10, %vm1126_vm12 }
 0xd05   :  { %v1108_v28 = vmul.f32 %v1422_v27, %v1107_v2  ;;  %v1122_v29 = vsub.f32 1.0, %v1121_v23 }
 0xd07   :  { %v1123_v32 = vmul.f32 %v1424_v21, %v1122_v29  ;;  %v1109_v20 = vadd.f32 %v1422_v27, %v1108_v28 }
 0xd09   :  { %v1124_v38 = vadd.f32 %v1424_v21, %v1123_v32  ;;  %v1113_v43 = vsel %vm1112_vm15, %v1422_v27, %v1109_v20 }
 0xd0a   :  { %v1118_v55 = vsel %vm1115_vm1, %v1117_v45, %v1113_v43 }
 0xd0b   :  { %v1128_v26 = vsel %vm1127_vm11, %v1424_v21, %v1124_v38  ;;  %v1137_v57 = vmul.f32 %v1118_v55, %v1899_v37 }
 0xd0c   :  { %v1133_v42 = vsel %vm1130_vm14, %v1132_v15, %v1128_v26 }
 0xd0d   :  { %v1135_v34 = vmul.f32 2.0, %v1133_v42 }
 0xd0f   :  { %v1317_v53 = vadd.f32 -1.0, %v1135_v34 }
 0xd11   :  { %v1138_v56 = vmul.f32 %v1317_v53, %v1118_v55 }
 0xd13   :  { %1140 = vrot.lane.b32.xlu0 %v1138_v56, %s1457_s2 }
 0xd1b   :  { %715 = vrot.lane.b32.xlu0 %v1826_v31, %s1459_s0  ;;  %v1156_v31 = vld [vmem:[#allocation3 + $0x20] sm:$0xff] }
 0xd23   :  { %1039 = vrot.lane.b32.xlu0 %v1902_v46, %s1459_s0 }
 0xd85   :  { %v1141_v58 = vpop.permute.xlu0 %1140 }
 0xd86   :  { %v1143_v59 = vadd.f32 %v1141_v58, %v1137_v57 }
 0xd88   :  { %1425 = vtanh.f32 %v1143_v59 }
 0xd8d   :  { %v716_v60 = vpop.permute.xlu0 %715 }
 0xd8e   :  { %v1426_v24 = vpop.eup %1425  ;;  %719 = vst.msk [vmem:[#allocation3 + $0x18] sm:$0xff] %vm394_vm0, %v716_v60 }
 0xd8f   :  { %v1145_v62 = vmul.f32 %v1426_v24, %v1133_v42 }
 0xd91   :  { %1147 = vrot.lane.b32.xlu1 %v1145_v62, %s1459_s0 }
 0xd95   :  { %v1040_v0 = vpop.permute.xlu0 %1039  ;;  %v1155_v1 = vld [vmem:[#allocation3 + $0x18] sm:$0xff] }
 0xd96   :  { %1043 = vst.msk [vmem:[#allocation3 + $0x30] sm:$0xff] %vm394_vm0, %v1040_v0  ;;  %1321 = vmatmul.msk.f32.gmra.mxu0 %vm394_vm0, %v1155_v1 }
 0xd9d   :  { %v1158_v4 = vld [vmem:[#allocation3 + $0x30] sm:$0xff] }
 0xd9e   :  { %1322 = vmatmul.msk.f32.gmra.mxu0 %vm394_vm0, %v1156_v31 }
 0xda6   :  { %1323 = vmatmul.msk.f32.gmra.mxu0 %vm394_vm0, %v1157_v3 }
 0xdae   :  { %1324 = vmatmul.msk.f32.gmra.mxu0 %vm394_vm0, %v1158_v4 }
 0xe03   :  { %v1148_v6 = vpop.permute.xlu1 %1147 }
 0xe04   :  { %1151 = vst.msk [vmem:[#allocation3 + $0x38] sm:$0xff] %vm394_vm0, %v1148_v6 }
 0xe0b   :  { %v1159_v8 = vld [vmem:[#allocation3 + $0x38] sm:$0xff] }
 0xe0c   :  { %1325 = vmatmul.msk.f32.gmra.mxu0 %vm394_vm0, %v1159_v8 }
 0xe13   :  { %v1218_v11 = vpop.f32.mrf.mxu0 }
 0xe14   :  { %v1219_v22 = vadd.f32 %v1890_v25, %v1218_v11 }
 0xe16   :  { %1236 = vst.msk [vmem:[%s1977_s6 + $0x18] sm:$0xff] %vm394_vm0, %v1219_v22 }
 0xe1b   :  { %v1221_v37 = vpop.f32.mrf.mxu0 }
 0xe1c   :  { %v1222_v5 = vadd.f32 %v1890_v25, %v1221_v37 }
 0xe1e   :  { %1237 = vst.msk [vmem:[%s1977_s6 + $0x20] sm:$0xff] %vm394_vm0, %v1222_v5 }
 0xe23   :  { %v1224_v46 = vpop.f32.mrf.mxu0 }
 0xe24   :  { %v1225_v48 = vadd.f32 %v1890_v25, %v1224_v46 }
 0xe26   :  { %1238 = vst.msk [vmem:[%s1977_s6 + $0x28] sm:$0xff] %vm394_vm0, %v1225_v48 }
 0xe2b   :  { %v1227_v47 = vpop.f32.mrf.mxu0 }
 0xe2c   :  { %v1228_v49 = vadd.f32 %v1890_v25, %v1227_v47 }
 0xe2e   :  { %1239 = vst.msk [vmem:[%s1977_s6 + $0x30] sm:$0xff] %vm394_vm0, %v1228_v49 }
 0xe89   :  { %v1230_v50 = vpop.f32.mrf.mxu0 }
 0xe8a   :  { %v1231_v51 = vadd.f32 %v1890_v25, %v1230_v50 }
 0xe8c   :  { %1240 = vst.msk [vmem:[%s1977_s6 + $0x38] sm:$0xff] %vm394_vm0, %v1231_v51 }
 0xe8d   :  { %1245 = vsyncpa [#allocation5], 1 }

</bundles_post_ra>
